<compile_context>
chip_gen: v6e
topology: v6e:2x2x1
jax: 0.10.0
libtpu: 0.0.40
codegen_flags: <defaults>
</compile_context>

<pallas_src>
import jax
import jax.numpy as jnp
from jax.experimental import pallas as pl
from jax.experimental.pallas import tpu as pltpu

IN_DIM = 2058
HIDDEN = 400
LATENT = 8
BATCH = 2

K_TILE = 768                      # multiple of 128 -> dense, unmasked K chunks


def _round_up(x, m):
    return (x + m - 1) // m * m


def encoder_kernel(x_ref, w1_ref, b1_ref, w2_ref, b2_ref, w3_ref, b3_ref,
                   u_ref, out_ref, h_acc):
    """One (batch-tile, K-tile) grid step.

    Layer-1 bf16 matmul is accumulated over the K grid axis into an f32 VMEM
    scratch; the two heads + reparameterization run only on the last K step
    and are stored as a single lane-dense (TB, 3*L) slab.
    """
    k = pl.program_id(1)

    @pl.when(k == 0)
    def _():
        h_acc[...] = jnp.zeros_like(h_acc)

    # bf16 x bf16 -> f32 accumulation on the MXU.
    h_acc[...] += jnp.dot(x_ref[...], w1_ref[...],
                          preferred_element_type=jnp.float32)

    @pl.when(k == pl.num_programs(1) - 1)
    def _():
        h = jnp.maximum(h_acc[...] + b1_ref[...], 0.0)                 # (TB, H)
        mu = jnp.dot(h, w2_ref[...],
                     preferred_element_type=jnp.float32) + b2_ref[...]
        sigma = jnp.exp(jnp.dot(h, w3_ref[...],
                                preferred_element_type=jnp.float32) + b3_ref[...])
        z = mu + sigma * u_ref[...]                                    # uniform noise
        out_ref[...] = jnp.concatenate([z, mu, sigma], axis=-1)        # one dense store


@jax.jit
def variational_encoder(x, w1, b1, w2, b2, w3, b3, key):
    # torch.flatten(x, start_dim=1)
    x2 = x.reshape(x.shape[0], -1).astype(jnp.float32)
    B, D = x2.shape
    H = w1.shape[1]
    L = w2.shape[1]

    # torch.rand_like(mu): uniform [0, 1) noise, generated outside the kernel
    # (portable across TPU generations and interpret mode).
    u = jax.random.uniform(key, (B, L), dtype=jnp.float32)

    # --- layout prep: bf16 layer-1 operands, zero-pad K to a K_TILE multiple ---
    d_pad = _round_up(D, K_TILE)
    xb = jnp.pad(x2.astype(jnp.bfloat16), ((0, 0), (0, d_pad - D)))
    w1b = jnp.pad(w1.astype(jnp.bfloat16), ((0, d_pad - D), (0, 0)))

    # Batch tiling: one tile if small, 128-row tiles (8-sublane aligned) if big.
    if B <= 128:
        tb, b_pad = B, B
    else:
        tb = 128
        b_pad = _round_up(B, tb)
    if b_pad != B:
        xb = jnp.pad(xb, ((0, b_pad - B), (0, 0)))
        u = jnp.pad(u, ((0, b_pad - B), (0, 0)))

    grid = (b_pad // tb, d_pad // K_TILE)

    cost = pl.CostEstimate(
        flops=2 * b_pad * d_pad * H + 4 * b_pad * H * L,
        transcendentals=b_pad * L,
        bytes_accessed=(xb.size * 2 + w1b.size * 2
                        + (b1.size + w2.size + b2.size + w3.size + b3.size) * 4
                        + u.size * 4 + b_pad * 3 * L * 4),
    )

    kern = pl.pallas_call(
        encoder_kernel,
        out_shape=jax.ShapeDtypeStruct((b_pad, 3 * L), jnp.float32),
        grid_spec=pltpu.PrefetchScalarGridSpec(
            num_scalar_prefetch=0,
            grid=grid,
            in_specs=[
                pl.BlockSpec((tb, K_TILE), lambda b, k: (b, k)),   # x   (bf16)
                pl.BlockSpec((K_TILE, H), lambda b, k: (k, 0)),    # W1  (bf16)
                pl.BlockSpec((1, H), lambda b, k: (0, 0)),         # b1
                pl.BlockSpec((H, L), lambda b, k: (0, 0)),         # W2
                pl.BlockSpec((1, L), lambda b, k: (0, 0)),         # b2
                pl.BlockSpec((H, L), lambda b, k: (0, 0)),         # W3
                pl.BlockSpec((1, L), lambda b, k: (0, 0)),         # b3
                pl.BlockSpec((tb, L), lambda b, k: (b, 0)),        # noise u
            ],
            out_specs=pl.BlockSpec((tb, 3 * L), lambda b, k: (b, 0)),
            scratch_shapes=[pltpu.VMEM((tb, H), jnp.float32)],     # layer-1 acc
        ),
        compiler_params=pltpu.CompilerParams(
            dimension_semantics=("parallel", "arbitrary"),
            vmem_limit_bytes=32 << 20,
        ),
        cost_estimate=cost,
    )
    out = kern(xb, w1b, b1, w2, b2, w3, b3, u)
    z = out[:B, :L]
    mu = out[:B, L:2 * L]
    sigma = out[:B, 2 * L:3 * L]
    return z, mu, sigma


def init_params(key):
    """Deterministic synthetic parameters matching nn.Linear shapes
    (pre-transposed to (in, out)); biases kept as (1, out) rows."""
    k1, k2, k3, k4, k5, k6 = jax.random.split(key, 6)
    w1 = jax.random.normal(k1, (IN_DIM, HIDDEN), jnp.float32) * 0.02
    b1 = jax.random.normal(k2, (1, HIDDEN), jnp.float32) * 0.01
    w2 = jax.random.normal(k3, (HIDDEN, LATENT), jnp.float32) * 0.02
    b2 = jax.random.normal(k4, (1, LATENT), jnp.float32) * 0.01
    w3 = jax.random.normal(k5, (HIDDEN, LATENT), jnp.float32) * 0.02
    b3 = jax.random.normal(k6, (1, LATENT), jnp.float32) * 0.01
    return w1, b1, w2, b2, w3, b3


if __name__ == "__main__":
    key = jax.random.PRNGKey(0)
    kx, kp, kn = jax.random.split(key, 3)
    x = jax.random.normal(kx, (BATCH, IN_DIM), jnp.float32)
    w1, b1, w2, b2, w3, b3 = init_params(kp)

    z, mu, sigma = variational_encoder(x, w1, b1, w2, b2, w3, b3, kn)
    jax.block_until_ready((z, mu, sigma))

    # Reference (same bf16 rounding of the layer-1 operands, same noise key).
    u = jax.random.uniform(kn, (BATCH, LATENT), dtype=jnp.float32)
    xb = x.astype(jnp.bfloat16).astype(jnp.float32)
    w1b = w1.astype(jnp.bfloat16).astype(jnp.float32)
    h_ref = jnp.maximum(xb @ w1b + b1, 0.0)
    mu_ref = h_ref @ w2 + b2
    sigma_ref = jnp.exp(h_ref @ w3 + b3)
    z_ref = mu_ref + sigma_ref * u

    assert jnp.allclose(mu, mu_ref, atol=1e-3, rtol=1e-3)
    assert jnp.allclose(sigma, sigma_ref, atol=1e-3, rtol=1e-3)
    assert jnp.allclose(z, z_ref, atol=1e-3, rtol=1e-3)
    assert bool(jnp.all(((z - mu) / sigma >= 0.0) & ((z - mu) / sigma < 1.0)))

    print("KERNEL_OK")
</pallas_src>

<mosaic_0001>
module attributes {stable_mosaic.version = 11 : i64} {
  func.func @encoder_kernel(%arg0: i32, %arg1: i32, %arg2: memref<2x768xbf16, #tpu.memory_space<vmem>>, %arg3: memref<768x400xbf16, #tpu.memory_space<vmem>>, %arg4: memref<1x400xf32, #tpu.memory_space<vmem>>, %arg5: memref<400x8xf32, #tpu.memory_space<vmem>>, %arg6: memref<1x8xf32, #tpu.memory_space<vmem>>, %arg7: memref<400x8xf32, #tpu.memory_space<vmem>>, %arg8: memref<1x8xf32, #tpu.memory_space<vmem>>, %arg9: memref<2x8xf32, #tpu.memory_space<vmem>>, %arg10: memref<2x24xf32, #tpu.memory_space<vmem>>, %arg11: memref<2x400xf32, #tpu.memory_space<vmem>>) attributes {dimension_semantics = [#tpu.dimension_semantics<parallel>, #tpu.dimension_semantics<arbitrary>], iteration_bounds = array<i64: 1, 3>, scalar_prefetch = 0 : i64, scratch_operands = 1 : i64, tpu.core_type = #tpu.core_type<tc>, window_params = [{transform_indices = @transform_0, window_bounds = array<i64: 2, 768>}, {transform_indices = @transform_1, window_bounds = array<i64: 768, 400>}, {pipeline_mode = #tpu.pipeline_mode<synchronous>, transform_indices = @transform_2, window_bounds = array<i64: 1, 400>}, {pipeline_mode = #tpu.pipeline_mode<synchronous>, transform_indices = @transform_3, window_bounds = array<i64: 400, 8>}, {pipeline_mode = #tpu.pipeline_mode<synchronous>, transform_indices = @transform_4, window_bounds = array<i64: 1, 8>}, {pipeline_mode = #tpu.pipeline_mode<synchronous>, transform_indices = @transform_5, window_bounds = array<i64: 400, 8>}, {pipeline_mode = #tpu.pipeline_mode<synchronous>, transform_indices = @transform_6, window_bounds = array<i64: 1, 8>}, {transform_indices = @transform_7, window_bounds = array<i64: 2, 8>}, {transform_indices = @transform_8, window_bounds = array<i64: 2, 24>}]} {
    %c0_i32 = arith.constant 0 : i32
    %0 = arith.cmpi eq, %arg1, %c0_i32 : i32
    %1 = arith.extui %0 : i1 to i32
    %c0_i32_0 = arith.constant 0 : i32
    %2 = arith.cmpi ne, %1, %c0_i32_0 : i32
    scf.if %2 {
      %cst_9 = arith.constant 0.000000e+00 : f32
      %12 = vector.broadcast %cst_9 : f32 to vector<2x400xf32>
      %c0_10 = arith.constant 0 : index
      %c0_11 = arith.constant 0 : index
      %13 = vector.load %arg11[%c0_10, %c0_11] : memref<2x400xf32, #tpu.memory_space<vmem>>, vector<2x400xf32>
      tpu.vector_store %arg11[%c0_10, %c0_11], %12 {strides = array<i32>} : memref<2x400xf32, #tpu.memory_space<vmem>>, vector<2x400xf32>,
    } else {
    }
    %c0 = arith.constant 0 : index
    %c0_1 = arith.constant 0 : index
    %3 = vector.load %arg11[%c0, %c0_1] : memref<2x400xf32, #tpu.memory_space<vmem>>, vector<2x400xf32>
    %c0_2 = arith.constant 0 : index
    %c0_3 = arith.constant 0 : index
    %4 = vector.load %arg2[%c0_2, %c0_3] : memref<2x768xbf16, #tpu.memory_space<vmem>>, vector<2x768xbf16>
    %c0_4 = arith.constant 0 : index
    %c0_5 = arith.constant 0 : index
    %5 = vector.load %arg3[%c0_4, %c0_5] : memref<768x400xbf16, #tpu.memory_space<vmem>>, vector<768x400xbf16>
    %cst = arith.constant dense<0.000000e+00> : vector<2x400xf32>
    %6 = tpu.matmul %4, %5, %cst {dimension_numbers = #tpu.dot_dimension_numbers<[1], [0], [0], [1], [0, 0, 1, 1], [], []>} : vector<2x768xbf16>, vector<768x400xbf16>, vector<2x400xf32> -> vector<2x400xf32>
    %7 = arith.addf %3, %6 : vector<2x400xf32>
    %c0_6 = arith.constant 0 : index
    %c0_7 = arith.constant 0 : index
    %8 = vector.load %arg11[%c0_6, %c0_7] : memref<2x400xf32, #tpu.memory_space<vmem>>, vector<2x400xf32>
    tpu.vector_store %arg11[%c0_6, %c0_7], %7 {strides = array<i32>} : memref<2x400xf32, #tpu.memory_space<vmem>>, vector<2x400xf32>,
    %c2_i32 = arith.constant 2 : i32
    %9 = arith.cmpi eq, %arg1, %c2_i32 : i32
    %10 = arith.extui %9 : i1 to i32
    %c0_i32_8 = arith.constant 0 : i32
    %11 = arith.cmpi ne, %10, %c0_i32_8 : i32
    scf.if %11 {
      %c0_9 = arith.constant 0 : index
      %c0_10 = arith.constant 0 : index
      %12 = vector.load %arg11[%c0_9, %c0_10] : memref<2x400xf32, #tpu.memory_space<vmem>>, vector<2x400xf32>
      %c0_11 = arith.constant 0 : index
      %c0_12 = arith.constant 0 : index
      %13 = vector.load %arg4[%c0_11, %c0_12] : memref<1x400xf32, #tpu.memory_space<vmem>>, vector<1x400xf32>
      %14 = vector.broadcast %13 : vector<1x400xf32> to vector<2x400xf32>
      %15 = arith.addf %12, %14 : vector<2x400xf32>
      %cst_13 = arith.constant 0.000000e+00 : f32
      %16 = vector.broadcast %cst_13 : f32 to vector<2x400xf32>
      %17 = arith.maximumf %15, %16 : vector<2x400xf32>
      %c0_14 = arith.constant 0 : index
      %c0_15 = arith.constant 0 : index
      %18 = vector.load %arg5[%c0_14, %c0_15] : memref<400x8xf32, #tpu.memory_space<vmem>>, vector<400x8xf32>
      %cst_16 = arith.constant dense<0.000000e+00> : vector<2x8xf32>
      %19 = tpu.matmul %17, %18, %cst_16 {dimension_numbers = #tpu.dot_dimension_numbers<[1], [0], [0], [1], [0, 0, 1, 1], [], []>} : vector<2x400xf32>, vector<400x8xf32>, vector<2x8xf32> -> vector<2x8xf32>
      %c0_17 = arith.constant 0 : index
      %c0_18 = arith.constant 0 : index
      %20 = vector.load %arg6[%c0_17, %c0_18] : memref<1x8xf32, #tpu.memory_space<vmem>>, vector<1x8xf32>
      %21 = vector.broadcast %20 : vector<1x8xf32> to vector<2x8xf32>
      %22 = arith.addf %19, %21 : vector<2x8xf32>
      %c0_19 = arith.constant 0 : index
      %c0_20 = arith.constant 0 : index
      %23 = vector.load %arg7[%c0_19, %c0_20] : memref<400x8xf32, #tpu.memory_space<vmem>>, vector<400x8xf32>
      %cst_21 = arith.constant dense<0.000000e+00> : vector<2x8xf32>
      %24 = tpu.matmul %17, %23, %cst_21 {dimension_numbers = #tpu.dot_dimension_numbers<[1], [0], [0], [1], [0, 0, 1, 1], [], []>} : vector<2x400xf32>, vector<400x8xf32>, vector<2x8xf32> -> vector<2x8xf32>
      %c0_22 = arith.constant 0 : index
      %c0_23 = arith.constant 0 : index
      %25 = vector.load %arg8[%c0_22, %c0_23] : memref<1x8xf32, #tpu.memory_space<vmem>>, vector<1x8xf32>
      %26 = vector.broadcast %25 : vector<1x8xf32> to vector<2x8xf32>
      %27 = arith.addf %24, %26 : vector<2x8xf32>
      %28 = math.exp %27 : vector<2x8xf32>
      %c0_24 = arith.constant 0 : index
      %c0_25 = arith.constant 0 : index
      %29 = vector.load %arg9[%c0_24, %c0_25] : memref<2x8xf32, #tpu.memory_space<vmem>>, vector<2x8xf32>
      %30 = arith.mulf %28, %29 : vector<2x8xf32>
      %31 = arith.addf %22, %30 : vector<2x8xf32>
      %32 = tpu.concatenate %31, %22, %28 in 1 : vector<2x8xf32>, vector<2x8xf32>, vector<2x8xf32> -> vector<2x24xf32>
      %c0_26 = arith.constant 0 : index
      %c0_27 = arith.constant 0 : index
      %33 = vector.load %arg10[%c0_26, %c0_27] : memref<2x24xf32, #tpu.memory_space<vmem>>, vector<2x24xf32>
      tpu.vector_store %arg10[%c0_26, %c0_27], %32 {strides = array<i32>} : memref<2x24xf32, #tpu.memory_space<vmem>>, vector<2x24xf32>,
    } else {
    }
    return
  }
  func.func @transform_0(%arg0: i32, %arg1: i32) -> (i32, i32) {
    %c0_i32 = arith.constant 0 : i32
    return %arg0, %arg1 : i32, i32
  }
  func.func @transform_1(%arg0: i32, %arg1: i32) -> (i32, i32) {
    %c0_i32 = arith.constant 0 : i32
    %c0_i32_0 = arith.constant 0 : i32
    return %arg1, %c0_i32 : i32, i32
  }
  func.func @transform_2(%arg0: i32, %arg1: i32) -> (i32, i32) {
    %c0_i32 = arith.constant 0 : i32
    %c0_i32_0 = arith.constant 0 : i32
    %c0_i32_1 = arith.constant 0 : i32
    return %c0_i32, %c0_i32_0 : i32, i32
  }
  func.func @transform_3(%arg0: i32, %arg1: i32) -> (i32, i32) {
    %c0_i32 = arith.constant 0 : i32
    %c0_i32_0 = arith.constant 0 : i32
    %c0_i32_1 = arith.constant 0 : i32
    return %c0_i32, %c0_i32_0 : i32, i32
  }
  func.func @transform_4(%arg0: i32, %arg1: i32) -> (i32, i32) {
    %c0_i32 = arith.constant 0 : i32
    %c0_i32_0 = arith.constant 0 : i32
    %c0_i32_1 = arith.constant 0 : i32
    return %c0_i32, %c0_i32_0 : i32, i32
  }
  func.func @transform_5(%arg0: i32, %arg1: i32) -> (i32, i32) {
    %c0_i32 = arith.constant 0 : i32
    %c0_i32_0 = arith.constant 0 : i32
    %c0_i32_1 = arith.constant 0 : i32
    return %c0_i32, %c0_i32_0 : i32, i32
  }
  func.func @transform_6(%arg0: i32, %arg1: i32) -> (i32, i32) {
    %c0_i32 = arith.constant 0 : i32
    %c0_i32_0 = arith.constant 0 : i32
    %c0_i32_1 = arith.constant 0 : i32
    return %c0_i32, %c0_i32_0 : i32, i32
  }
  func.func @transform_7(%arg0: i32, %arg1: i32) -> (i32, i32) {
    %c0_i32 = arith.constant 0 : i32
    %c0_i32_0 = arith.constant 0 : i32
    return %arg0, %c0_i32 : i32, i32
  }
  func.func @transform_8(%arg0: i32, %arg1: i32) -> (i32, i32) {
    %c0_i32 = arith.constant 0 : i32
    %c0_i32_0 = arith.constant 0 : i32
    return %arg0, %c0_i32 : i32, i32
  }
}

</mosaic_0001>

<bundles_post_ra>
// kernel: variational_encoder.1
= control target key start
LH: loop header
LB: loop body
LE: loop exit
PB: predicated region body
PF: predicated region fallthrough
CT: control target
= control target key end

     0   :  { %s3111_s27 = smov 0   ;;  %s3113_s28 = smov 0   ;;  %s3772_s0 = inlined_call_operand.vmem [shape: bf16[2,2304], index: 0, kind: input, shape index: {}]   ;;  %s3773_s1 = inlined_call_operand.vmem [shape: bf16[2304,400], index: 1, kind: input, shape index: {}]   ;;  %s3774_s2 = inlined_call_operand.vmem [shape: f32[1,400], index: 2, kind: input, shape index: {}]   ;;  %s3775_s3 = inlined_call_operand.vmem [shape: f32[400,8], index: 3, kind: input, shape index: {}]   ;;  %s3776_s4 = inlined_call_operand.vmem [shape: f32[1,8], index: 4, kind: input, shape index: {}]   ;;  %s3777_s5 = inlined_call_operand.vmem [shape: f32[400,8], index: 5, kind: input, shape index: {}]   ;;  %s3778_s6 = inlined_call_operand.vmem [shape: f32[1,8], index: 6, kind: input, shape index: {}]   ;;  %s3779_s7 = inlined_call_operand.vmem [shape: f32[2,8], index: 7, kind: input, shape index: {}]   ;;  %s3780_s8 = inlined_call_operand.vmem [shape: f32[2,24], index: 8, kind: output, shape index: {}]  }
   0x1   :  { %s3115_s29 = smov 0  }
   0x2 LB: > { %s27_s30 = sadd.s32 1, %s3054_s28  ;;  %p2440_p0 = scmp.ge.s32.totalorder %s3058_s29, 1  ;;  %s3058_s29 = sphi %s3115_s29, %s18_s29   ;;  %s3054_s28 = sphi %s3113_s28, %s3782_s28   ;;  %s3050_s27 = sphi %s3111_s27, %s3781_s27  }
   0x3   : > { %p28_p1 = scmp.ge.s32.totalorder %s27_s30, 3  ;;  %p301_p2 = scmp.lt.s32.totalorder %s3058_s29, 4 }
   0x5   : > { %s3784_s30 = smov (%p28_p1, %s27_s30), 0  ;;  %p302_p3 = pnand %p2440_p0, %p301_p2 }
   0x6   : > { %s347_s9 = smul.u32 (!%p302_p3), 6, %s3050_s27  ;;  %p2443_p6 = scmp.ne.s32.totalorder (!%p302_p3), %s3050_s27, 0 }
   0x7   : > { %305 = sbr.rel (%p302_p3) target bundleno = 829 (0x33d), region = 52 }
   0x8   : > { %s356_s10 = smul.u32 (!%p302_p3), 96, %s3050_s27  ;;  %p350_p4 = scmp.lt.s32.totalorder (!%p302_p3), %s347_s9, 17 }
   0xa   : > { %p357_p5 = scmp.lt.s32.totalorder (!%p302_p3), %s356_s10, 287 }
   0xc   : > { %s3786_s9 = smov (!%p350_p4, %s347_s9), 17  ;;  %s3788_s10 = smov (!%p357_p5, %s356_s10), 287 }
   0xd   : > { %s354_s13 = scalar_lea.vmem %s3772_s0, %s3786_s9  ;;  %s2644_s14 = sshll.u32 %s3788_s10, 4 }
   0xe   : > { %s3142_s17 = scalar_lea.vmem %s3773_s1, %s2644_s14  ;;  %374 = sbr.rel (%p2443_p6) target bundleno = 24 (0x18), region = 56 }
  0x13   : > { %vm375_vm0 = vcmask 1041408   ;;  %vm376_vm1 = vcmask 1043458   ;;  %vm378_vm2 = vcmask 1045508   ;;  %vm380_vm3 = vcmask 130054  }
  0x14   : > { %vm377_vm4 = vmor %vm376_vm1, %vm375_vm0  ;;  %v3060_v0 = vmov 0.0  }
  0x15   : > { %vm379_vm5 = vmor %vm378_vm2, %vm377_vm4 }
  0x16   : > { %vm381_vm6 = vmor %vm380_vm3, %vm379_vm5 }
  0x17   : > { %382 = vst.msk [vmem:[#allocation2] sm:$0xff] %vm381_vm6, %v3060_v0 }
  0x18 PF: > { %v2745_v1 = vld [vmem:[%s3142_s17 + $0xe4] ss:$16 sps:$4 sm:$0xff]   ;;  %v2749_v3 = vld [vmem:[%s3142_s17 + $0xe0] ss:$16 sps:$4 sm:$0xff]   ;;  %v3061_v37 = vmov 1966171168   ;;  %v582_v39 = vlaneseq }
  0x19   : > { %v2747_v2 = vld [vmem:[%s3142_s17 + $0x2e4] ss:$16 sps:$4 sm:$0xff]   ;;  %1591 = vmatprep.subr.bf16.mxu0 %v2745_v1  ;;  %v2750_v4 = vld [vmem:[%s3142_s17 + $0x2e0] ss:$16 sps:$4 sm:$0xff]   ;;  %v580_v38 = vunpack.c.l.s4 %v3061_v37  ;;  %vm1860_vm7 = vcmask 1041408   ;;  %vm1861_vm8 = vcmask 1043458  }
  0x1a   : > { %1632 = vmatprep.subr.bf16.mxu1 %v2747_v2  ;;  %v2751_v5 = vld [vmem:[%s3142_s17 + $0xc4] ss:$16 sps:$4 sm:$0xff]   ;;  %1592 = vmatpush1.bf16.msra.mxu0 %v2749_v3  ;;  %v2755_v7 = vld [vmem:[%s3142_s17 + $0xc0] ss:$16 sps:$4 sm:$0xff]   ;;  %v3184_v44 = vshrl.u32 %v582_v39, 7  ;;  %vm1862_vm9 = vmor %vm1861_vm8, %vm1860_vm7  ;;  %vm1863_vm10 = vcmask 1045508  }
  0x1b   : > { %1633 = vmatpush1.bf16.msra.mxu1 %v2750_v4  ;;  %v2753_v6 = vld [vmem:[%s3142_s17 + $0x2c4] ss:$16 sps:$4 sm:$0xff]   ;;  %1593 = vmatprep.subr.bf16.mxu0 %v2751_v5  ;;  %v2756_v8 = vld [vmem:[%s3142_s17 + $0x2c0] ss:$16 sps:$4 sm:$0xff]   ;;  %v581_v43 = vunpack.c.0.s8 %v580_v38  ;;  %v2868_v38 = vld [vmem:[%s3142_s17 + $0x68] ss:$16 sps:$4 sm:$0xff]  }
  0x1c   : > { %1634 = vmatprep.subr.bf16.mxu1 %v2753_v6  ;;  %v2757_v9 = vld [vmem:[%s3142_s17 + $0xa4] ss:$16 sps:$4 sm:$0xff]   ;;  %v2761_v11 = vld [vmem:[%s3142_s17 + $0xa0] ss:$16 sps:$4 sm:$0xff]   ;;  %vm1864_vm11 = vmor %vm1863_vm10, %vm1862_vm9  ;;  %vm1865_vm12 = vcmask 130054   ;;  %p2636_p7 = scmp.ne.s32.totalorder %s3050_s27, 2 }
  0x1d   : > { %v2759_v10 = vld [vmem:[%s3142_s17 + $0x2a4] ss:$16 sps:$4 sm:$0xff]   ;;  %v2762_v12 = vld [vmem:[%s3142_s17 + $0x2a0] ss:$16 sps:$4 sm:$0xff]   ;;  %v3192_v50 = vsub.s32 %v581_v43, %v3184_v44  ;;  %vm1866_vm13 = vmor %vm1865_vm12, %vm1864_vm11  ;;  %s3064_s15 = smov (!%p2636_p7), 8   ;;  %s3065_s20 = smov (!%p2636_p7), 16  }
  0x1e   : > { %1594 = vmatpush1.bf16.msra.mxu0 %v2755_v7  ;;  %v2763_v13 = vld [vmem:[%s3142_s17 + $0x84] ss:$16 sps:$4 sm:$0xff]   ;;  %v2767_v15 = vld [vmem:[%s3142_s17 + $0x80] ss:$16 sps:$4 sm:$0xff]  }
  0x1f   : > { %1635 = vmatpush1.bf16.msra.mxu1 %v2756_v8  ;;  %1595 = vmatprep.subr.bf16.mxu0 %v2757_v9  ;;  %v2765_v14 = vld [vmem:[%s3142_s17 + $0x284] ss:$16 sps:$4 sm:$0xff]   ;;  %v2768_v16 = vld [vmem:[%s3142_s17 + $0x280] ss:$16 sps:$4 sm:$0xff]  }
  0x20   : > { %1636 = vmatprep.subr.bf16.mxu1 %v2759_v10  ;;  %v2769_v17 = vld [vmem:[%s3142_s17 + $0x64] ss:$16 sps:$4 sm:$0xff]   ;;  %v2773_v19 = vld [vmem:[%s3142_s17 + $0x60] ss:$16 sps:$4 sm:$0xff]  }
  0x21   : > { %v2771_v18 = vld [vmem:[%s3142_s17 + $0x264] ss:$16 sps:$4 sm:$0xff]   ;;  %v2774_v20 = vld [vmem:[%s3142_s17 + $0x260] ss:$16 sps:$4 sm:$0xff]  }
  0x22   : > { %1596 = vmatpush1.bf16.msra.mxu0 %v2761_v11  ;;  %v2775_v21 = vld [vmem:[%s3142_s17 + $0x44] ss:$16 sps:$4 sm:$0xff]   ;;  %v2779_v23 = vld [vmem:[%s3142_s17 + $0x40] ss:$16 sps:$4 sm:$0xff]  }
  0x23   : > { %1637 = vmatpush1.bf16.msra.mxu1 %v2762_v12  ;;  %1597 = vmatprep.subr.bf16.mxu0 %v2763_v13  ;;  %v2777_v22 = vld [vmem:[%s3142_s17 + $0x244] ss:$16 sps:$4 sm:$0xff]   ;;  %v2780_v24 = vld [vmem:[%s3142_s17 + $0x240] ss:$16 sps:$4 sm:$0xff]  }
  0x24   : > { %1638 = vmatprep.subr.bf16.mxu1 %v2765_v14  ;;  %v2781_v25 = vld [vmem:[%s3142_s17 + $0x24] ss:$16 sps:$4 sm:$0xff]   ;;  %v2785_v27 = vld [vmem:[%s3142_s17 + $0x20] ss:$16 sps:$4 sm:$0xff]  }
  0x25   : > { %v2783_v26 = vld [vmem:[%s3142_s17 + $0x224] ss:$16 sps:$4 sm:$0xff]   ;;  %v2786_v28 = vld [vmem:[%s3142_s17 + $0x220] ss:$16 sps:$4 sm:$0xff]  }
  0x26   : > { %1598 = vmatpush1.bf16.msra.mxu0 %v2767_v15  ;;  %v2787_v29 = vld [vmem:[%s3142_s17 + $0x4] ss:$16 sps:$4 sm:$0xff]   ;;  %v2791_v31 = vld [vmem:[%s3142_s17] ss:$16 sps:$4 sm:$0xff]  }
  0x27   : > { %1639 = vmatpush1.bf16.msra.mxu1 %v2768_v16  ;;  %1599 = vmatprep.subr.bf16.mxu0 %v2769_v17  ;;  %v2789_v30 = vld [vmem:[%s3142_s17 + $0x204] ss:$16 sps:$4 sm:$0xff]   ;;  %v2792_v32 = vld [vmem:[%s3142_s17 + $0x200] ss:$16 sps:$4 sm:$0xff]   ;;  %v2846_v17 = vld [vmem:[%s3142_s17 + $0xec] ss:$16 sps:$4 sm:$0xff]  }
  0x28   : > { %1640 = vmatprep.subr.bf16.mxu1 %v2771_v18  ;;  %v2793_v33 = vld [vmem:[%s3142_s17 + $0x1e4] ss:$16 sps:$4 sm:$0xff]   ;;  %v2797_v35 = vld [vmem:[%s3142_s17 + $0x1e0] ss:$16 sps:$4 sm:$0xff]  }
  0x29   : > { %v2795_v34 = vld [vmem:[%s3142_s17 + $0x3e4] ss:$16 sps:$4 sm:$0xff]   ;;  %v2798_v36 = vld [vmem:[%s3142_s17 + $0x3e0] ss:$16 sps:$4 sm:$0xff]  }
  0x2a   : > { %1600 = vmatpush1.bf16.msra.mxu0 %v2773_v19  ;;  %v2799_v40 = vld [vmem:[%s3142_s17 + $0x1c4] ss:$16 sps:$4 sm:$0xff]   ;;  %v2803_v42 = vld [vmem:[%s3142_s17 + $0x1c0] ss:$16 sps:$4 sm:$0xff]  }
  0x2b   : > { %1641 = vmatpush1.bf16.msra.mxu1 %v2774_v20  ;;  %1601 = vmatprep.subr.bf16.mxu0 %v2775_v21  ;;  %v2801_v41 = vld [vmem:[%s3142_s17 + $0x3c4] ss:$16 sps:$4 sm:$0xff]   ;;  %v2804_v45 = vld [vmem:[%s3142_s17 + $0x3c0] ss:$16 sps:$4 sm:$0xff]   ;;  %v2844_v21 = vld [vmem:[%s3142_s17 + $0xe8] ss:$16 sps:$4 sm:$0xff]  }
  0x2c   : > { %1642 = vmatprep.subr.bf16.mxu1 %v2777_v22  ;;  %v2805_v46 = vld [vmem:[%s3142_s17 + $0x1a4] ss:$16 sps:$4 sm:$0xff]   ;;  %v2809_v48 = vld [vmem:[%s3142_s17 + $0x1a0] ss:$16 sps:$4 sm:$0xff]  }
  0x2d   : > { %v2807_v47 = vld [vmem:[%s3142_s17 + $0x3a4] ss:$16 sps:$4 sm:$0xff]   ;;  %v2810_v49 = vld [vmem:[%s3142_s17 + $0x3a0] ss:$16 sps:$4 sm:$0xff]  }
  0x2e   : > { %1602 = vmatpush1.bf16.msra.mxu0 %v2779_v23  ;;  %v2811_v51 = vld [vmem:[%s3142_s17 + $0x184] ss:$16 sps:$4 sm:$0xff]   ;;  %v2815_v54 = vld [vmem:[%s3142_s17 + $0x180] ss:$16 sps:$4 sm:$0xff]   ;;  %v2852_v23 = vld [vmem:[%s3142_s17 + $0xcc] ss:$16 sps:$4 sm:$0xff]  }
  0x2f   : > { %1643 = vmatpush1.bf16.msra.mxu1 %v2780_v24  ;;  %1603 = vmatprep.subr.bf16.mxu0 %v2781_v25  ;;  %v2813_v52 = vld [vmem:[%s3142_s17 + $0x384] ss:$16 sps:$4 sm:$0xff]   ;;  %v2816_v57 = vld [vmem:[%s3142_s17 + $0x380] ss:$16 sps:$4 sm:$0xff]  }
  0x30   : > { %1644 = vmatprep.subr.bf16.mxu1 %v2783_v26  ;;  %v384_v53 = vld [vmem:[%s354_s13] sm:$0x3f]  ;;  %v2850_v26 = vld [vmem:[%s3142_s17 + $0xc8] ss:$16 sps:$4 sm:$0xff]  }
  0x31   : > { %v585_v55 = vrot.slane %v384_v53, %v3192_v50  ;;  %v578_v56 = vcombine.high %v384_v53, %v384_v53  ;;  %v2817_v58 = vld [vmem:[%s3142_s17 + $0x164] ss:$16 sps:$4 sm:$0xff]   ;;  %v2821_v62 = vld [vmem:[%s3142_s17 + $0x160] ss:$16 sps:$4 sm:$0xff]   ;;  %v2894_v53 = vld [vmem:[%s3142_s17 + $0x1ec] ss:$16 sps:$4 sm:$0xff]  }
  0x32   : > { %1604 = vmatpush1.bf16.msra.mxu0 %v2785_v27  ;;  %v2819_v59 = vld [vmem:[%s3142_s17 + $0x364] ss:$16 sps:$4 sm:$0xff]   ;;  %v2822_v1 = vld [vmem:[%s3142_s17 + $0x360] ss:$16 sps:$4 sm:$0xff]  }
  0x33   : > { %1645 = vmatpush1.bf16.msra.mxu1 %v2786_v28  ;;  %1605 = vmatprep.subr.bf16.mxu0 %v2787_v29  ;;  %v593_v60 = vcombine.high %v585_v55, %v585_v55  ;;  %v592_v61 = vrot.slane %v578_v56, %v3192_v50  ;;  %v2823_v2 = vld [vmem:[%s3142_s17 + $0x144] ss:$16 sps:$4 sm:$0xff]   ;;  %v2827_v5 = vld [vmem:[%s3142_s17 + $0x140] ss:$16 sps:$4 sm:$0xff]   ;;  %v3228_v14 = vrot.slane %v585_v55, %v3192_v50  ;;  %v2858_v28 = vld [vmem:[%s3142_s17 + $0xac] ss:$16 sps:$4 sm:$0xff]  }
  0x34   : > { %1646 = vmatprep.subr.bf16.mxu1 %v2789_v30  ;;  %v2825_v3 = vld [vmem:[%s3142_s17 + $0x344] ss:$16 sps:$4 sm:$0xff]   ;;  %v2828_v6 = vld [vmem:[%s3142_s17 + $0x340] ss:$16 sps:$4 sm:$0xff]   ;;  %v2856_v30 = vld [vmem:[%s3142_s17 + $0xa8] ss:$16 sps:$4 sm:$0xff]  }
  0x35   : > { %v615_v63 = vrot.slane %v593_v60, %v3192_v50  ;;  %v3210_v0 = vrot.slane %v592_v61, %v3192_v50  ;;  %v2829_v7 = vld [vmem:[%s3142_s17 + $0x124] ss:$16 sps:$4 sm:$0xff]   ;;  %v2833_v9 = vld [vmem:[%s3142_s17 + $0x120] ss:$16 sps:$4 sm:$0xff]   ;;  %v594_v18 = vcombine.high %v592_v61, %v592_v61  ;;  %v3235_v19 = vcombine.high %v3228_v14, %v3228_v14  ;;  %v2892_v55 = vld [vmem:[%s3142_s17 + $0x1e8] ss:$16 sps:$4 sm:$0xff]  }
  0x36   : > { %1606 = vmatpush1.bf16.msra.mxu0 %v2791_v31  ;;  %v2831_v8 = vld [vmem:[%s3142_s17 + $0x324] ss:$16 sps:$4 sm:$0xff]   ;;  %v2834_v10 = vld [vmem:[%s3142_s17 + $0x320] ss:$16 sps:$4 sm:$0xff]   ;;  %v2906_v61 = vld [vmem:[%s3142_s17 + $0x1ac] ss:$16 sps:$4 sm:$0xff]  }
  0x37   : > { %1647 = vmatpush1.bf16.msra.mxu1 %v2792_v32  ;;  %1607 = vmatprep.subr.bf16.mxu0 %v2793_v33  ;;  %v3215_v4 = vcombine.high %v615_v63, %v615_v63  ;;  %v2835_v11 = vld [vmem:[%s3142_s17 + $0x104] ss:$16 sps:$4 sm:$0xff]   ;;  %v2839_v13 = vld [vmem:[%s3142_s17 + $0x100] ss:$16 sps:$4 sm:$0xff]   ;;  %v3242_v24 = vrot.slane %v594_v18, %v3192_v50  ;;  %v2864_v32 = vld [vmem:[%s3142_s17 + $0x8c] ss:$16 sps:$4 sm:$0xff]  }
  0x38   : > { %1648 = vmatprep.subr.bf16.mxu1 %v2795_v34  ;;  %1623 = vmatprep.mubr.bf16.mxu0 %v615_v63  ;;  %v2837_v12 = vld [vmem:[%s3142_s17 + $0x304] ss:$16 sps:$4 sm:$0xff]   ;;  %v2840_v15 = vld [vmem:[%s3142_s17 + $0x300] ss:$16 sps:$4 sm:$0xff]   ;;  %v2862_v34 = vld [vmem:[%s3142_s17 + $0x88] ss:$16 sps:$4 sm:$0xff]  }
  0x39   : > { %1664 = vmatprep.mubr.bf16.mxu1 %v3215_v4  ;;  %v2843_v16 = vld [vmem:[%s3142_s17 + $0x4e4] ss:$16 sps:$4 sm:$0xff]   ;;  %v2841_v20 = vld [vmem:[%s3142_s17 + $0x4e0] ss:$16 sps:$4 sm:$0xff]   ;;  %v2928_v18 = vld [vmem:[%s3142_s17 + $0x128] ss:$16 sps:$4 sm:$0xff]  }
  0x3a   : > { %1608 = vmatpush2.bf16.msra.mxu0 %v2797_v35  ;;  %v2849_v22 = vld [vmem:[%s3142_s17 + $0x4c4] ss:$16 sps:$4 sm:$0xff]   ;;  %v2847_v25 = vld [vmem:[%s3142_s17 + $0x4c0] ss:$16 sps:$4 sm:$0xff]  }
  0x3b   : > { %1649 = vmatpush2.bf16.msra.mxu1 %v2798_v36  ;;  %1609 = vmatprep.subr.bf16.mxu0 %v2799_v40  ;;  %v2855_v27 = vld [vmem:[%s3142_s17 + $0x4a4] ss:$16 sps:$4 sm:$0xff]   ;;  %v2853_v29 = vld [vmem:[%s3142_s17 + $0x4a0] ss:$16 sps:$4 sm:$0xff]   ;;  %v2870_v36 = vld [vmem:[%s3142_s17 + $0x6c] ss:$16 sps:$4 sm:$0xff]  }
  0x3c   : > { %1650 = vmatprep.subr.bf16.mxu1 %v2801_v41  ;;  %v2861_v31 = vld [vmem:[%s3142_s17 + $0x484] ss:$16 sps:$4 sm:$0xff]   ;;  %v2859_v33 = vld [vmem:[%s3142_s17 + $0x480] ss:$16 sps:$4 sm:$0xff]   ;;  %v2876_v40 = vld [vmem:[%s3142_s17 + $0x4c] ss:$16 sps:$4 sm:$0xff]  }
  0x3d   : > { %v2867_v35 = vld [vmem:[%s3142_s17 + $0x464] ss:$16 sps:$4 sm:$0xff]   ;;  %v2865_v37 = vld [vmem:[%s3142_s17 + $0x460] ss:$16 sps:$4 sm:$0xff]  }
  0x3e   : > { %1610 = vmatpush2.bf16.msra.mxu0 %v2803_v42  ;;  %v2873_v39 = vld [vmem:[%s3142_s17 + $0x444] ss:$16 sps:$4 sm:$0xff]   ;;  %v2871_v41 = vld [vmem:[%s3142_s17 + $0x440] ss:$16 sps:$4 sm:$0xff]   ;;  %v2874_v42 = vld [vmem:[%s3142_s17 + $0x48] ss:$16 sps:$4 sm:$0xff]  }
  0x3f   : > { %1651 = vmatpush2.bf16.msra.mxu1 %v2804_v45  ;;  %1611 = vmatprep.subr.bf16.mxu0 %v2805_v46  ;;  %v2879_v43 = vld [vmem:[%s3142_s17 + $0x424] ss:$16 sps:$4 sm:$0xff]   ;;  %v2882_v45 = vld [vmem:[%s3142_s17 + $0x2c] ss:$16 sps:$4 sm:$0xff]   ;;  %v2877_v46 = vld [vmem:[%s3142_s17 + $0x420] ss:$16 sps:$4 sm:$0xff]  }
  0x40   : > { %1652 = vmatprep.subr.bf16.mxu1 %v2807_v47  ;;  %v2880_v47 = vld [vmem:[%s3142_s17 + $0x28] ss:$16 sps:$4 sm:$0xff]   ;;  %v2883_v50 = vld [vmem:[%s3142_s17 + $0x400] ss:$16 sps:$4 sm:$0xff]   ;;  %v2897_v56 = vld [vmem:[%s3142_s17 + $0x5c4] ss:$16 sps:$4 sm:$0xff]  }
  0x41   : > { %v2903_v60 = vld [vmem:[%s3142_s17 + $0x5a4] ss:$16 sps:$4 sm:$0xff]  }
  0x42   : > { %1612 = vmatpush2.bf16.msra.mxu0 %v2809_v48  ;;  %v2885_v48 = vld [vmem:[%s3142_s17 + $0x404] ss:$16 sps:$4 sm:$0xff]  }
  0x43   : > { %1653 = vmatpush2.bf16.msra.mxu1 %v2810_v49  ;;  %1613 = vmatprep.subr.bf16.mxu0 %v2811_v51  ;;  %v2888_v49 = vld [vmem:[%s3142_s17 + $0xc] ss:$16 sps:$4 sm:$0xff]   ;;  %v2886_v51 = vld [vmem:[%s3142_s17 + $0x8] ss:$16 sps:$4 sm:$0xff]  }
  0x44   : > { %1654 = vmatprep.subr.bf16.mxu1 %v2813_v52  ;;  %v2891_v52 = vld [vmem:[%s3142_s17 + $0x5e4] ss:$16 sps:$4 sm:$0xff]  }
  0x46   : > { %1614 = vmatpush2.bf16.msra.mxu0 %v2815_v54  ;;  %v2889_v54 = vld [vmem:[%s3142_s17 + $0x5e0] ss:$16 sps:$4 sm:$0xff]  }
  0x47   : > { %1655 = vmatpush2.bf16.msra.mxu1 %v2816_v57  ;;  %1615 = vmatprep.subr.bf16.mxu0 %v2817_v58  ;;  %v2900_v57 = vld [vmem:[%s3142_s17 + $0x1cc] ss:$16 sps:$4 sm:$0xff]   ;;  %v2895_v58 = vld [vmem:[%s3142_s17 + $0x5c0] ss:$16 sps:$4 sm:$0xff]  }
  0x48   : > { %1656 = vmatprep.subr.bf16.mxu1 %v2819_v59  ;;  %v2898_v59 = vld [vmem:[%s3142_s17 + $0x1c8] ss:$16 sps:$4 sm:$0xff]  }
  0x4a   : > { %1616 = vmatpush2.bf16.msra.mxu0 %v2821_v62  ;;  %v2901_v62 = vld [vmem:[%s3142_s17 + $0x5a0] ss:$16 sps:$4 sm:$0xff]  }
  0x4b   : > { %1657 = vmatpush2.bf16.msra.mxu1 %v2822_v1  ;;  %1617 = vmatprep.subr.bf16.mxu0 %v2823_v2  ;;  %v2909_v1 = vld [vmem:[%s3142_s17 + $0x584] ss:$16 sps:$4 sm:$0xff]   ;;  %v2912_v2 = vld [vmem:[%s3142_s17 + $0x18c] ss:$16 sps:$4 sm:$0xff]  }
  0x4c   : > { %1658 = vmatprep.subr.bf16.mxu1 %v2825_v3  ;;  %v2907_v3 = vld [vmem:[%s3142_s17 + $0x580] ss:$16 sps:$4 sm:$0xff]  }
  0x4e   : > { %1618 = vmatpush2.bf16.msra.mxu0 %v2827_v5  ;;  %v2910_v5 = vld [vmem:[%s3142_s17 + $0x188] ss:$16 sps:$4 sm:$0xff]  }
  0x4f   : > { %1659 = vmatpush2.bf16.msra.mxu1 %v2828_v6  ;;  %1619 = vmatprep.subr.bf16.mxu0 %v2829_v7  ;;  %v2915_v6 = vld [vmem:[%s3142_s17 + $0x564] ss:$16 sps:$4 sm:$0xff]   ;;  %v2918_v7 = vld [vmem:[%s3142_s17 + $0x16c] ss:$16 sps:$4 sm:$0xff]  }
  0x50   : > { %1660 = vmatprep.subr.bf16.mxu1 %v2831_v8  ;;  %v2913_v8 = vld [vmem:[%s3142_s17 + $0x560] ss:$16 sps:$4 sm:$0xff]  }
  0x52   : > { %1620 = vmatpush2.bf16.msra.mxu0 %v2833_v9  ;;  %v2916_v9 = vld [vmem:[%s3142_s17 + $0x168] ss:$16 sps:$4 sm:$0xff]  }
  0x53   : > { %1661 = vmatpush2.bf16.msra.mxu1 %v2834_v10  ;;  %1621 = vmatprep.subr.bf16.mxu0 %v2835_v11  ;;  %v2921_v10 = vld [vmem:[%s3142_s17 + $0x544] ss:$16 sps:$4 sm:$0xff]   ;;  %v2924_v11 = vld [vmem:[%s3142_s17 + $0x14c] ss:$16 sps:$4 sm:$0xff]  }
  0x54   : > { %1662 = vmatprep.subr.bf16.mxu1 %v2837_v12  ;;  %v2919_v12 = vld [vmem:[%s3142_s17 + $0x540] ss:$16 sps:$4 sm:$0xff]  }
  0x56   : > { %1622 = vmatpush2.bf16.msra.mxu0 %v2839_v13  ;;  %v2922_v13 = vld [vmem:[%s3142_s17 + $0x148] ss:$16 sps:$4 sm:$0xff]  }
  0x57   : > { %1663 = vmatpush2.bf16.msra.mxu1 %v2840_v15  ;;  %1673 = vmatprep.subr.bf16.mxu0 %v2843_v16  ;;  %v2927_v15 = vld [vmem:[%s3142_s17 + $0x524] ss:$16 sps:$4 sm:$0xff]   ;;  %v2930_v16 = vld [vmem:[%s3142_s17 + $0x12c] ss:$16 sps:$4 sm:$0xff]  }
  0x58   : > { %1714 = vmatprep.subr.bf16.mxu1 %v2846_v17  ;;  %v2925_v17 = vld [vmem:[%s3142_s17 + $0x520] ss:$16 sps:$4 sm:$0xff]  }
  0x59   : > { %1624 = vmatmul.mubr.bf16.vlgmr.msra.gmra.mxu0 %v3228_v14 }
  0x5a   : > { %1665 = vmatmul.mubr.bf16.vlgmr.msra.gmra.mxu1 %v3235_v19  ;;  %1674 = vmatpush1.bf16.msra.mxu0 %v2841_v20  ;;  %v2933_v20 = vld [vmem:[%s3142_s17 + $0x504] ss:$16 sps:$4 sm:$0xff]  }
  0x5b   : > { %1715 = vmatpush1.bf16.msra.mxu1 %v2844_v21  ;;  %1675 = vmatprep.subr.bf16.mxu0 %v2849_v22  ;;  %v2936_v21 = vld [vmem:[%s3142_s17 + $0x10c] ss:$16 sps:$4 sm:$0xff]   ;;  %v2931_v22 = vld [vmem:[%s3142_s17 + $0x500] ss:$16 sps:$4 sm:$0xff]  }
  0x5c   : > { %1716 = vmatprep.subr.bf16.mxu1 %v2852_v23  ;;  %1705 = vmatprep.mubr.bf16.mxu0 %v3242_v24  ;;  %v2934_v23 = vld [vmem:[%s3142_s17 + $0x108] ss:$16 sps:$4 sm:$0xff]  }
  0x5d   : > { %1746 = vmatprep.mubr.bf16.mxu1 %v615_v63  ;;  %v2904_v63 = vld [vmem:[%s3142_s17 + $0x1a8] ss:$16 sps:$4 sm:$0xff]  }
  0x5e   : > { %1676 = vmatpush1.bf16.msra.mxu0 %v2847_v25  ;;  %v2940_v25 = vld [vmem:[%s3142_s17 + $0x2ec] ss:$16 sps:$4 sm:$0xff]  }
  0x5f   : > { %1717 = vmatpush1.bf16.msra.mxu1 %v2850_v26  ;;  %1677 = vmatprep.subr.bf16.mxu0 %v2855_v27  ;;  %v2943_v26 = vld [vmem:[%s3142_s17 + $0x4ec] ss:$16 sps:$4 sm:$0xff]   ;;  %v2938_v27 = vld [vmem:[%s3142_s17 + $0x2e8] ss:$16 sps:$4 sm:$0xff]  }
  0x60   : > { %1718 = vmatprep.subr.bf16.mxu1 %v2858_v28  ;;  %v2941_v28 = vld [vmem:[%s3142_s17 + $0x4e8] ss:$16 sps:$4 sm:$0xff]  }
  0x62   : > { %1678 = vmatpush1.bf16.msra.mxu0 %v2853_v29  ;;  %v2946_v29 = vld [vmem:[%s3142_s17 + $0x2cc] ss:$16 sps:$4 sm:$0xff]  }
  0x63   : > { %1719 = vmatpush1.bf16.msra.mxu1 %v2856_v30  ;;  %1679 = vmatprep.subr.bf16.mxu0 %v2861_v31  ;;  %v2949_v30 = vld [vmem:[%s3142_s17 + $0x4cc] ss:$16 sps:$4 sm:$0xff]   ;;  %v2944_v31 = vld [vmem:[%s3142_s17 + $0x2c8] ss:$16 sps:$4 sm:$0xff]  }
  0x64   : > { %1720 = vmatprep.subr.bf16.mxu1 %v2864_v32  ;;  %v2947_v32 = vld [vmem:[%s3142_s17 + $0x4c8] ss:$16 sps:$4 sm:$0xff]  }
  0x66   : > { %1680 = vmatpush1.bf16.msra.mxu0 %v2859_v33  ;;  %v2952_v33 = vld [vmem:[%s3142_s17 + $0x2ac] ss:$16 sps:$4 sm:$0xff]  }
  0x67   : > { %1721 = vmatpush1.bf16.msra.mxu1 %v2862_v34  ;;  %1681 = vmatprep.subr.bf16.mxu0 %v2867_v35  ;;  %v2955_v34 = vld [vmem:[%s3142_s17 + $0x4ac] ss:$16 sps:$4 sm:$0xff]   ;;  %v2953_v35 = vld [vmem:[%s3142_s17 + $0x4a8] ss:$16 sps:$4 sm:$0xff]  }
  0x68   : > { %1722 = vmatprep.subr.bf16.mxu1 %v2870_v36  ;;  %v2958_v36 = vld [vmem:[%s3142_s17 + $0x28c] ss:$16 sps:$4 sm:$0xff]  }
  0x6a   : > { %1682 = vmatpush1.bf16.msra.mxu0 %v2865_v37  ;;  %v2961_v37 = vld [vmem:[%s3142_s17 + $0x48c] ss:$16 sps:$4 sm:$0xff]  }
  0x6b   : > { %1723 = vmatpush1.bf16.msra.mxu1 %v2868_v38  ;;  %1683 = vmatprep.subr.bf16.mxu0 %v2873_v39  ;;  %v2956_v38 = vld [vmem:[%s3142_s17 + $0x288] ss:$16 sps:$4 sm:$0xff]   ;;  %v2967_v39 = vld [vmem:[%s3142_s17 + $0x46c] ss:$16 sps:$4 sm:$0xff]  }
  0x6c   : > { %1724 = vmatprep.subr.bf16.mxu1 %v2876_v40  ;;  %v2962_v40 = vld [vmem:[%s3142_s17 + $0x268] ss:$16 sps:$4 sm:$0xff]  }
  0x6e   : > { %1684 = vmatpush1.bf16.msra.mxu0 %v2871_v41  ;;  %v2965_v41 = vld [vmem:[%s3142_s17 + $0x468] ss:$16 sps:$4 sm:$0xff]  }
  0x6f   : > { %1725 = vmatpush1.bf16.msra.mxu1 %v2874_v42  ;;  %1685 = vmatprep.subr.bf16.mxu0 %v2879_v43  ;;  %v2970_v42 = vld [vmem:[%s3142_s17 + $0x24c] ss:$16 sps:$4 sm:$0xff]  }
  0x70   : > { %1726 = vmatprep.subr.bf16.mxu1 %v2882_v45  ;;  %v2973_v43 = vld [vmem:[%s3142_s17 + $0x44c] ss:$16 sps:$4 sm:$0xff]   ;;  %v2968_v45 = vld [vmem:[%s3142_s17 + $0x248] ss:$16 sps:$4 sm:$0xff]  }
  0x72   : > { %1686 = vmatpush1.bf16.msra.mxu0 %v2877_v46  ;;  %v2971_v46 = vld [vmem:[%s3142_s17 + $0x448] ss:$16 sps:$4 sm:$0xff]  }
  0x73   : > { %1727 = vmatpush1.bf16.msra.mxu1 %v2880_v47  ;;  %1687 = vmatprep.subr.bf16.mxu0 %v2885_v48  ;;  %v2976_v47 = vld [vmem:[%s3142_s17 + $0x22c] ss:$16 sps:$4 sm:$0xff]  }
  0x74   : > { %1728 = vmatprep.subr.bf16.mxu1 %v2888_v49  ;;  %v2979_v48 = vld [vmem:[%s3142_s17 + $0x42c] ss:$16 sps:$4 sm:$0xff]   ;;  %v2974_v49 = vld [vmem:[%s3142_s17 + $0x228] ss:$16 sps:$4 sm:$0xff]  }
  0x76   : > { %1688 = vmatpush1.bf16.msra.mxu0 %v2883_v50  ;;  %v2977_v50 = vld [vmem:[%s3142_s17 + $0x428] ss:$16 sps:$4 sm:$0xff]  }
  0x77   : > { %1729 = vmatpush1.bf16.msra.mxu1 %v2886_v51  ;;  %1689 = vmatprep.subr.bf16.mxu0 %v2891_v52  ;;  %v2982_v51 = vld [vmem:[%s3142_s17 + $0x20c] ss:$16 sps:$4 sm:$0xff]  }
  0x78   : > { %1730 = vmatprep.subr.bf16.mxu1 %v2894_v53  ;;  %v2985_v52 = vld [vmem:[%s3142_s17 + $0x40c] ss:$16 sps:$4 sm:$0xff]   ;;  %v2980_v53 = vld [vmem:[%s3142_s17 + $0x208] ss:$16 sps:$4 sm:$0xff]  }
  0x7a   : > { %1690 = vmatpush2.bf16.msra.mxu0 %v2889_v54  ;;  %v2983_v54 = vld [vmem:[%s3142_s17 + $0x408] ss:$16 sps:$4 sm:$0xff]  }
  0x7b   : > { %1731 = vmatpush2.bf16.msra.mxu1 %v2892_v55  ;;  %1691 = vmatprep.subr.bf16.mxu0 %v2897_v56  ;;  %v2988_v55 = vld [vmem:[%s3142_s17 + $0x3ec] ss:$16 sps:$4 sm:$0xff]  }
  0x7c   : > { %1732 = vmatprep.subr.bf16.mxu1 %v2900_v57  ;;  %v2991_v56 = vld [vmem:[%s3142_s17 + $0x5ec] ss:$16 sps:$4 sm:$0xff]   ;;  %v2986_v57 = vld [vmem:[%s3142_s17 + $0x3e8] ss:$16 sps:$4 sm:$0xff]  }
  0x7e   : > { %1692 = vmatpush2.bf16.msra.mxu0 %v2895_v58  ;;  %v2989_v58 = vld [vmem:[%s3142_s17 + $0x5e8] ss:$16 sps:$4 sm:$0xff]  }
  0x7f   : > { %1733 = vmatpush2.bf16.msra.mxu1 %v2898_v59  ;;  %1693 = vmatprep.subr.bf16.mxu0 %v2903_v60  ;;  %v2994_v59 = vld [vmem:[%s3142_s17 + $0x3cc] ss:$16 sps:$4 sm:$0xff]  }
  0x80   : > { %1734 = vmatprep.subr.bf16.mxu1 %v2906_v61  ;;  %v2997_v60 = vld [vmem:[%s3142_s17 + $0x5cc] ss:$16 sps:$4 sm:$0xff]   ;;  %v2992_v61 = vld [vmem:[%s3142_s17 + $0x3c8] ss:$16 sps:$4 sm:$0xff]  }
  0x82   : > { %1694 = vmatpush2.bf16.msra.mxu0 %v2901_v62  ;;  %v2995_v62 = vld [vmem:[%s3142_s17 + $0x5c8] ss:$16 sps:$4 sm:$0xff]  }
  0x83   : > { %1735 = vmatpush2.bf16.msra.mxu1 %v2904_v63  ;;  %1695 = vmatprep.subr.bf16.mxu0 %v2909_v1  ;;  %v3000_v63 = vld [vmem:[%s3142_s17 + $0x3ac] ss:$16 sps:$4 sm:$0xff]  }
  0x84   : > { %1736 = vmatprep.subr.bf16.mxu1 %v2912_v2  ;;  %v3003_v1 = vld [vmem:[%s3142_s17 + $0x5ac] ss:$16 sps:$4 sm:$0xff]   ;;  %v2998_v2 = vld [vmem:[%s3142_s17 + $0x3a8] ss:$16 sps:$4 sm:$0xff]  }
  0x86   : > { %1696 = vmatpush2.bf16.msra.mxu0 %v2907_v3  ;;  %v3001_v3 = vld [vmem:[%s3142_s17 + $0x5a8] ss:$16 sps:$4 sm:$0xff]  }
  0x87   : > { %1737 = vmatpush2.bf16.msra.mxu1 %v2910_v5  ;;  %1697 = vmatprep.subr.bf16.mxu0 %v2915_v6  ;;  %v3006_v5 = vld [vmem:[%s3142_s17 + $0x38c] ss:$16 sps:$4 sm:$0xff]  }
  0x88   : > { %1738 = vmatprep.subr.bf16.mxu1 %v2918_v7  ;;  %v3009_v6 = vld [vmem:[%s3142_s17 + $0x58c] ss:$16 sps:$4 sm:$0xff]   ;;  %v3004_v7 = vld [vmem:[%s3142_s17 + $0x388] ss:$16 sps:$4 sm:$0xff]  }
  0x8a   : > { %1698 = vmatpush2.bf16.msra.mxu0 %v2913_v8  ;;  %v3007_v8 = vld [vmem:[%s3142_s17 + $0x588] ss:$16 sps:$4 sm:$0xff]  }
  0x8b   : > { %1739 = vmatpush2.bf16.msra.mxu1 %v2916_v9  ;;  %1699 = vmatprep.subr.bf16.mxu0 %v2921_v10  ;;  %v3012_v9 = vld [vmem:[%s3142_s17 + $0x36c] ss:$16 sps:$4 sm:$0xff]  }
  0x8c   : > { %1740 = vmatprep.subr.bf16.mxu1 %v2924_v11  ;;  %v3015_v10 = vld [vmem:[%s3142_s17 + $0x56c] ss:$16 sps:$4 sm:$0xff]   ;;  %v3010_v11 = vld [vmem:[%s3142_s17 + $0x368] ss:$16 sps:$4 sm:$0xff]  }
  0x8e   : > { %1700 = vmatpush2.bf16.msra.mxu0 %v2919_v12  ;;  %v3013_v12 = vld [vmem:[%s3142_s17 + $0x568] ss:$16 sps:$4 sm:$0xff]  }
  0x8f   : > { %1741 = vmatpush2.bf16.msra.mxu1 %v2922_v13  ;;  %1701 = vmatprep.subr.bf16.mxu0 %v2927_v15  ;;  %v3018_v13 = vld [vmem:[%s3142_s17 + $0x34c] ss:$16 sps:$4 sm:$0xff]  }
  0x90   : > { %1742 = vmatprep.subr.bf16.mxu1 %v2930_v16  ;;  %v3021_v15 = vld [vmem:[%s3142_s17 + $0x54c] ss:$16 sps:$4 sm:$0xff]   ;;  %v3016_v16 = vld [vmem:[%s3142_s17 + $0x348] ss:$16 sps:$4 sm:$0xff]  }
  0x92   : > { %1702 = vmatpush2.bf16.msra.mxu0 %v2925_v17  ;;  %v3019_v17 = vld [vmem:[%s3142_s17 + $0x548] ss:$16 sps:$4 sm:$0xff]  }
  0x93   : > { %1743 = vmatpush2.bf16.msra.mxu1 %v2928_v18  ;;  %1703 = vmatprep.subr.bf16.mxu0 %v2933_v20  ;;  %v3024_v18 = vld [vmem:[%s3142_s17 + $0x32c] ss:$16 sps:$4 sm:$0xff]  }
  0x94   : > { %1744 = vmatprep.subr.bf16.mxu1 %v2936_v21  ;;  %v3027_v20 = vld [vmem:[%s3142_s17 + $0x52c] ss:$16 sps:$4 sm:$0xff]   ;;  %v3022_v21 = vld [vmem:[%s3142_s17 + $0x328] ss:$16 sps:$4 sm:$0xff]  }
  0x96   : > { %1704 = vmatpush2.bf16.msra.mxu0 %v2931_v22  ;;  %v3025_v22 = vld [vmem:[%s3142_s17 + $0x528] ss:$16 sps:$4 sm:$0xff]  }
  0x97   : > { %1745 = vmatpush2.bf16.msra.mxu1 %v2934_v23  ;;  %1755 = vmatprep.subr.bf16.mxu0 %v2940_v25  ;;  %v3030_v23 = vld [vmem:[%s3142_s17 + $0x30c] ss:$16 sps:$4 sm:$0xff]  }
  0x98   : > { %1796 = vmatprep.subr.bf16.mxu1 %v2943_v26  ;;  %v3033_v25 = vld [vmem:[%s3142_s17 + $0x50c] ss:$16 sps:$4 sm:$0xff]   ;;  %v3028_v26 = vld [vmem:[%s3142_s17 + $0x308] ss:$16 sps:$4 sm:$0xff]  }
  0x99   : > { %1706 = vmatmul.mubr.bf16.vlgmr.msra.gmra.mxu0 %v3210_v0 }
  0x9a   : > { %1747 = vmatmul.mubr.bf16.vlgmr.msra.gmra.mxu1 %v3228_v14  ;;  %1756 = vmatpush1.bf16.msra.mxu0 %v2938_v27  ;;  %v2950_v14 = vld [vmem:[%s3142_s17 + $0x2a8] ss:$16 sps:$4 sm:$0xff]  }
  0x9b   : > { %1797 = vmatpush1.bf16.msra.mxu1 %v2941_v28  ;;  %1757 = vmatprep.subr.bf16.mxu0 %v2946_v29  ;;  %v3031_v27 = vld [vmem:[%s3142_s17 + $0x508] ss:$16 sps:$4 sm:$0xff]  }
  0x9c   : > { %1798 = vmatprep.subr.bf16.mxu1 %v2949_v30  ;;  %1787 = vmatprep.mubr.bf16.mxu0 %v3215_v4  ;;  %v2959_v4 = vld [vmem:[%s3142_s17 + $0x488] ss:$16 sps:$4 sm:$0xff]  }
  0x9d   : > { %1828 = vmatprep.mubr.bf16.mxu1 %v3242_v24  ;;  %v2964_v24 = vld [vmem:[%s3142_s17 + $0x26c] ss:$16 sps:$4 sm:$0xff]  }
  0x9e   : > { %1758 = vmatpush1.bf16.msra.mxu0 %v2944_v31 }
  0x9f   : > { %1799 = vmatpush1.bf16.msra.mxu1 %v2947_v32  ;;  %1759 = vmatprep.subr.bf16.mxu0 %v2952_v33 }
  0xa0   : > { %1800 = vmatprep.subr.bf16.mxu1 %v2955_v34 }
  0xa2   : > { %1760 = vmatpush1.bf16.msra.mxu0 %v2950_v14 }
  0xa3   : > { %1801 = vmatpush1.bf16.msra.mxu1 %v2953_v35  ;;  %1761 = vmatprep.subr.bf16.mxu0 %v2958_v36 }
  0xa4   : > { %1802 = vmatprep.subr.bf16.mxu1 %v2961_v37 }
  0xa6   : > { %1762 = vmatpush1.bf16.msra.mxu0 %v2956_v38 }
  0xa7   : > { %1803 = vmatpush1.bf16.msra.mxu1 %v2959_v4  ;;  %1763 = vmatprep.subr.bf16.mxu0 %v2964_v24 }
  0xa8   : > { %1804 = vmatprep.subr.bf16.mxu1 %v2967_v39 }
  0xaa   : > { %1764 = vmatpush1.bf16.msra.mxu0 %v2962_v40 }
  0xab   : > { %1805 = vmatpush1.bf16.msra.mxu1 %v2965_v41  ;;  %1765 = vmatprep.subr.bf16.mxu0 %v2970_v42 }
  0xac   : > { %1806 = vmatprep.subr.bf16.mxu1 %v2973_v43 }
  0xae   : > { %1766 = vmatpush1.bf16.msra.mxu0 %v2968_v45  ;;  %v3062_v45 = vmov 1983009808  }
  0xaf   : > { %1807 = vmatpush1.bf16.msra.mxu1 %v2971_v46  ;;  %1767 = vmatprep.subr.bf16.mxu0 %v2976_v47  ;;  %v1844_v46 = vunpack.c.l.s4 %v3062_v45 }
  0xb0   : > { %1808 = vmatprep.subr.bf16.mxu1 %v2979_v48 }
  0xb2   : > { %1768 = vmatpush1.bf16.msra.mxu0 %v2974_v49  ;;  %v1845_v49 = vunpack.c.0.s8 %v1844_v46 }
  0xb3   : > { %1809 = vmatpush1.bf16.msra.mxu1 %v2977_v50  ;;  %1769 = vmatprep.subr.bf16.mxu0 %v2982_v51 }
  0xb4   : > { %1810 = vmatprep.subr.bf16.mxu1 %v2985_v52 }
  0xb6   : > { %1770 = vmatpush1.bf16.msra.mxu0 %v2980_v53 }
  0xb7   : > { %1811 = vmatpush1.bf16.msra.mxu1 %v2983_v54  ;;  %1771 = vmatprep.subr.bf16.mxu0 %v2988_v55 }
  0xb8   : > { %1812 = vmatprep.subr.bf16.mxu1 %v2991_v56  ;;  %v3376_v56 = vsub.s32 %v1845_v49, %v3184_v44 }
  0xba   : > { %1772 = vmatpush2.bf16.msra.mxu0 %v2986_v57 }
  0xbb   : > { %1813 = vmatpush2.bf16.msra.mxu1 %v2989_v58  ;;  %1773 = vmatprep.subr.bf16.mxu0 %v2994_v59 }
  0xbc   : > { %1814 = vmatprep.subr.bf16.mxu1 %v2997_v60 }
  0xbe   : > { %1774 = vmatpush2.bf16.msra.mxu0 %v2992_v61 }
  0xbf   : > { %1815 = vmatpush2.bf16.msra.mxu1 %v2995_v62  ;;  %1775 = vmatprep.subr.bf16.mxu0 %v3000_v63 }
  0xc0   : > { %1816 = vmatprep.subr.bf16.mxu1 %v3003_v1  ;;  %v383_v1 = vld [vmem:[#allocation2] sm:$0xff] }
  0xc2   : > { %1776 = vmatpush2.bf16.msra.mxu0 %v2998_v2 }
  0xc3   : > { %1817 = vmatpush2.bf16.msra.mxu1 %v3001_v3  ;;  %1777 = vmatprep.subr.bf16.mxu0 %v3006_v5 }
  0xc4   : > { %1818 = vmatprep.subr.bf16.mxu1 %v3009_v6 }
  0xc6   : > { %1778 = vmatpush2.bf16.msra.mxu0 %v3004_v7 }
  0xc7   : > { %1819 = vmatpush2.bf16.msra.mxu1 %v3007_v8  ;;  %1779 = vmatprep.subr.bf16.mxu0 %v3012_v9 }
  0xc8   : > { %1820 = vmatprep.subr.bf16.mxu1 %v3015_v10 }
  0xca   : > { %1780 = vmatpush2.bf16.msra.mxu0 %v3010_v11 }
  0xcb   : > { %1821 = vmatpush2.bf16.msra.mxu1 %v3013_v12  ;;  %1781 = vmatprep.subr.bf16.mxu0 %v3018_v13 }
  0xcc   : > { %1822 = vmatprep.subr.bf16.mxu1 %v3021_v15 }
  0xce   : > { %1782 = vmatpush2.bf16.msra.mxu0 %v3016_v16 }
  0xcf   : > { %1823 = vmatpush2.bf16.msra.mxu1 %v3019_v17  ;;  %1783 = vmatprep.subr.bf16.mxu0 %v3024_v18 }
  0xd0   : > { %1824 = vmatprep.subr.bf16.mxu1 %v3027_v20 }
  0xd2   : > { %1784 = vmatpush2.bf16.msra.mxu0 %v3022_v21 }
  0xd3   : > { %1825 = vmatpush2.bf16.msra.mxu1 %v3025_v22  ;;  %1785 = vmatprep.subr.bf16.mxu0 %v3030_v23 }
  0xd4   : > { %1826 = vmatprep.subr.bf16.mxu1 %v3033_v25 }
  0xd6   : > { %1786 = vmatpush2.bf16.msra.mxu0 %v3028_v26 }
  0xd7   : > { %1827 = vmatpush2.bf16.msra.mxu1 %v3031_v27 }
  0xd9   : > { %1788 = vmatmul.mubr.bf16.vlgmr.msra.gmra.mxu0 %v3235_v19 }
  0xda   : > { %1829 = vmatmul.mubr.bf16.vlgmr.msra.gmra.mxu1 %v3210_v0 }
 0x119   : > { %v1625_v28 = vpop.f32.mrf.mxu0 }
 0x11a   : > { %v1666_v29 = vpop.f32.mrf.mxu1 }
 0x11b   : > { %v1667_v30 = vadd.f32 %v1666_v29, %v1625_v28  ;;  %v1627_v31 = vpop.f32.mrf.mxu0 }
 0x11c   : > { %v1668_v32 = vpop.f32.mrf.mxu1 }
 0x11d   : > { %v1669_v33 = vadd.f32 %v1668_v32, %v1627_v31  ;;  %v1629_v34 = vpop.f32.mrf.mxu0 }
 0x11e   : > { %v1670_v14 = vpop.f32.mrf.mxu1 }
 0x11f   : > { %v1630_v35 = vpop.f32.mrf.mxu0 }
 0x120   : > { %v1671_v36 = vpop.f32.mrf.mxu1 }
 0x159   : > { %v1707_v37 = vpop.f32.mrf.mxu0 }
 0x15a   : > { %v1748_v38 = vpop.f32.mrf.mxu1  ;;  %v1708_v4 = vadd.f32 %v1707_v37, %v1667_v30 }
 0x15b   : > { %v1709_v24 = vpop.f32.mrf.mxu0 }
 0x15c   : > { %v1750_v39 = vpop.f32.mrf.mxu1  ;;  %v1710_v40 = vadd.f32 %v1709_v24, %v1669_v33 }
 0x15d   : > { %v1711_v41 = vpop.f32.mrf.mxu0 }
 0x15e   : > { %v1752_v19 = vpop.f32.mrf.mxu1  ;;  %v1841_v42 = vcombine.low %v1708_v4, %v1710_v40 }
 0x15f   : > { %v1712_v0 = vpop.f32.mrf.mxu0 }
 0x160   : > { %v1753_v43 = vpop.f32.mrf.mxu1  ;;  %v1849_v62 = vrot.slane %v1841_v42, %v3376_v56 }
 0x199   : > { %v1789_v47 = vpop.f32.mrf.mxu0 }
 0x19a   : > { %v1830_v48 = vpop.f32.mrf.mxu1  ;;  %v1790_v50 = vadd.f32 %v1789_v47, %v1748_v38 }
 0x19b   : > { %v1791_v51 = vpop.f32.mrf.mxu0 }
 0x19c   : > { %v1832_v52 = vpop.f32.mrf.mxu1  ;;  %v1792_v53 = vadd.f32 %v1791_v51, %v1750_v39  ;;  %v1831_v57 = vadd.f32 %v1830_v48, %v1790_v50 }
 0x19d   : > { %v1793_v54 = vpop.f32.mrf.mxu0 }
 0x19e   : > { %v1834_v55 = vpop.f32.mrf.mxu1  ;;  %v1833_v58 = vadd.f32 %v1832_v52, %v1792_v53 }
 0x19f   : > { %v1794_v59 = vpop.f32.mrf.mxu0 }
 0x1a0   : > { %v1835_v60 = vpop.f32.mrf.mxu1  ;;  %v1842_v61 = vcombine.low %v1831_v57, %v1833_v58 }
 0x1a2   : > { %v1856_v63 = vrot.slane %v1842_v61, %v3376_v56 }
 0x1a4   : > { %v1857_v2 = vcombine.low %v1849_v62, %v1856_v63  ;;  %1871 = sbr.rel (%p2636_p7) target bundleno = 829 (0x33d), region = 60 }
 0x1a6   : > { %v1859_v3 = vadd.f32 %v1857_v2, %v383_v1 }
 0x1a8   : > { %1867 = vst.msk [vmem:[#allocation2] sm:$0xff] %vm1866_vm13, %v1859_v3 }
 0x1a9   : > { %v1942_v5 = vld [vmem:[%s3775_s3 + $0xf8] sm:$0xff]  ;;  %v3063_v8 = vmov 0.0   ;;  %v1941_v9 = vld [vmem:[%s3775_s3 + $0xf0] sm:$0xff]  ;;  %v1940_v12 = vld [vmem:[%s3775_s3 + $0xe8] sm:$0xff]  ;;  %v1877_v33 = vsub.s32 0, %v3184_v44  ;;  %v1881_v34 = vsub.s32 1, %v3184_v44 }
 0x1aa   : > { %v1926_v6 = vld [vmem:[%s3775_s3 + $0x78] sm:$0xff]  ;;  %2645 = vmatprep.subr.mxu0 %v1942_v5  ;;  %2062 = vmatprep.subr.mxu1 %v3063_v8  ;;  %v1925_v10 = vld [vmem:[%s3775_s3 + $0x70] sm:$0xff]  ;;  %v1924_v13 = vld [vmem:[%s3775_s3 + $0x68] sm:$0xff]  ;;  %v1885_v14 = vsub.s32 2, %v3184_v44  ;;  %v1889_v36 = vsub.s32 3, %v3184_v44  ;;  %vm1989_vm14 = vcmask 130048  }
 0x1ab   : > { %v1958_v7 = vld [vmem:[%s3775_s3 + $0x178] sm:$0xff]  ;;  %v1957_v11 = vld [vmem:[%s3775_s3 + $0x170] sm:$0xff]  ;;  %2646 = vmatpush3.msra.mxu0 %v1926_v6  ;;  %v1956_v15 = vld [vmem:[%s3775_s3 + $0x168] sm:$0xff]  ;;  %vm2342_vm15 = vcmask 64512   ;;  %vm2345_vm0 = vcmask 189440  }
 0x1ac   : > { %2063 = vmatpush1.msra.mxu1 %v1958_v7  ;;  %2647 = vmatprep.subr.mxu0 %v1941_v9  ;;  %v1939_v16 = vld [vmem:[%s3775_s3 + $0xe0] sm:$0xff]  ;;  %v1938_v20 = vld [vmem:[%s3775_s3 + $0xd8] sm:$0xff]  ;;  %v1937_v23 = vld [vmem:[%s3775_s3 + $0xd0] sm:$0xff] }
 0x1ad   : > { %2064 = vmatprep.subr.mxu1 %v3063_v8  ;;  %2648 = vmatpush3.msra.mxu0 %v1925_v10  ;;  %v1923_v17 = vld [vmem:[%s3775_s3 + $0x60] sm:$0xff]  ;;  %v1922_v21 = vld [vmem:[%s3775_s3 + $0x58] sm:$0xff]  ;;  %v1921_v25 = vld [vmem:[%s3775_s3 + $0x50] sm:$0xff] }
 0x1ae   : > { %2065 = vmatpush1.msra.mxu1 %v1957_v11  ;;  %2649 = vmatprep.subr.mxu0 %v1940_v12  ;;  %v1955_v18 = vld [vmem:[%s3775_s3 + $0x160] sm:$0xff]  ;;  %v1954_v22 = vld [vmem:[%s3775_s3 + $0x158] sm:$0xff]  ;;  %v1953_v26 = vld [vmem:[%s3775_s3 + $0x150] sm:$0xff] }
 0x1af   : > { %2066 = vmatprep.subr.mxu1 %v3063_v8  ;;  %2650 = vmatpush3.msra.mxu0 %v1924_v13  ;;  %v1936_v27 = vld [vmem:[%s3775_s3 + $0xc8] sm:$0xff]  ;;  %v1935_v30 = vld [vmem:[%s3775_s3 + $0xc0] sm:$0xff]  ;;  %v1934_v35 = vld [vmem:[%s3775_s3 + $0xb8] sm:$0xff] }
 0x1b0   : > { %2067 = vmatpush1.msra.mxu1 %v1956_v15  ;;  %2651 = vmatprep.subr.mxu0 %v1939_v16  ;;  %v1920_v28 = vld [vmem:[%s3775_s3 + $0x48] sm:$0xff]  ;;  %v1919_v31 = vld [vmem:[%s3775_s3 + $0x40] sm:$0xff]  ;;  %v1918_v37 = vld [vmem:[%s3775_s3 + $0x38] sm:$0xff] }
 0x1b1   : > { %2068 = vmatprep.subr.mxu1 %v3063_v8  ;;  %2652 = vmatpush3.msra.mxu0 %v1923_v17  ;;  %v1952_v29 = vld [vmem:[%s3775_s3 + $0x148] sm:$0xff]  ;;  %v1951_v32 = vld [vmem:[%s3775_s3 + $0x140] sm:$0xff]  ;;  %v1950_v38 = vld [vmem:[%s3775_s3 + $0x138] sm:$0xff] }
 0x1b2   : > { %2069 = vmatpush1.msra.mxu1 %v1955_v18  ;;  %2653 = vmatprep.subr.mxu0 %v1938_v20  ;;  %v1933_v4 = vld [vmem:[%s3775_s3 + $0xb0] sm:$0xff]  ;;  %v1873_v44 = vld [vmem:[%s3774_s2] sm:$0xf]  ;;  %v1932_v42 = vld [vmem:[%s3775_s3 + $0xa8] sm:$0xff] }
 0x1b3   : > { %2070 = vmatprep.subr.mxu1 %v3063_v8  ;;  %2654 = vmatpush3.msra.mxu0 %v1922_v21  ;;  %v1917_v24 = vld [vmem:[%s3775_s3 + $0x30] sm:$0xff]  ;;  %v1878_v40 = vrot.slane %v1873_v44, %v1877_v33  ;;  %v1882_v41 = vrot.slane %v1873_v44, %v1881_v34  ;;  %v1886_v19 = vrot.slane %v1873_v44, %v1885_v14  ;;  %v1916_v43 = vld [vmem:[%s3775_s3 + $0x28] sm:$0xff]  ;;  %v1931_v47 = vld [vmem:[%s3775_s3 + $0xa0] sm:$0xff] }
 0x1b4   : > { %2071 = vmatpush1.msra.mxu1 %v1954_v22  ;;  %2655 = vmatprep.subr.mxu0 %v1937_v23  ;;  %v1949_v39 = vld [vmem:[%s3775_s3 + $0x130] sm:$0xff]  ;;  %v1890_v0 = vrot.slane %v1873_v44, %v1889_v36  ;;  %v1948_v45 = vld [vmem:[%s3775_s3 + $0x128] sm:$0xff]  ;;  %v1915_v49 = vld [vmem:[%s3775_s3 + $0x20] sm:$0xff] }
 0x1b5   : > { %2072 = vmatprep.subr.mxu1 %v3063_v8  ;;  %2656 = vmatpush3.msra.mxu0 %v1921_v25  ;;  %v1891_v46 = vcombine.low %v1878_v40, %v1882_v41  ;;  %v1947_v50 = vld [vmem:[%s3775_s3 + $0x120] sm:$0xff]  ;;  %v1930_v52 = vld [vmem:[%s3775_s3 + $0x98] sm:$0xff]  ;;  %v1929_v58 = vld [vmem:[%s3775_s3 + $0x90] sm:$0xff] }
 0x1b6   : > { %2073 = vmatpush1.msra.mxu1 %v1953_v26  ;;  %2657 = vmatprep.subr.mxu0 %v1936_v27  ;;  %v1892_v48 = vcombine.low %v1886_v19, %v1890_v0  ;;  %v1914_v54 = vld [vmem:[%s3775_s3 + $0x18] sm:$0xff]  ;;  %v1872_v57 = vld [vmem:[#allocation2] sm:$0xff]  ;;  %v1913_v60 = vld [vmem:[%s3775_s3 + $0x10] sm:$0xff] }
 0x1b7   : > { %2074 = vmatprep.subr.mxu1 %v3063_v8  ;;  %2658 = vmatpush3.msra.mxu0 %v1920_v28  ;;  %v1899_v51 = vrot.slane %v1891_v46, %v3376_v56  ;;  %v1946_v55 = vld [vmem:[%s3775_s3 + $0x118] sm:$0xff]  ;;  %v1945_v61 = vld [vmem:[%s3775_s3 + $0x110] sm:$0xff]  ;;  %v1928_v62 = vld [vmem:[%s3775_s3 + $0x88] sm:$0xff] }
 0x1b8   : > { %2075 = vmatpush1.msra.mxu1 %v1952_v29  ;;  %2659 = vmatprep.subr.mxu0 %v1935_v30  ;;  %v1906_v53 = vrot.slane %v1892_v48, %v3376_v56  ;;  %v1912_v1 = vld [vmem:[%s3775_s3 + $0x8] sm:$0xff]  ;;  %v1927_v3 = vld [vmem:[%s3775_s3 + $0x80] sm:$0xff]  ;;  %v2163_v10 = vld [vmem:[%s3777_s5 + $0xf8] sm:$0xff] }
 0x1b9   : > { %2076 = vmatprep.subr.mxu1 %v3063_v8  ;;  %2660 = vmatpush3.msra.mxu0 %v1919_v31  ;;  %v1944_v2 = vld [vmem:[%s3775_s3 + $0x108] sm:$0xff]  ;;  %v1911_v6 = vld [vmem:[%s3775_s3] sm:$0xff]  ;;  %v2147_v16 = vld [vmem:[%s3777_s5 + $0x78] sm:$0xff] }
 0x1ba   : > { %2077 = vmatpush1.msra.mxu1 %v1951_v32  ;;  %2661 = vmatprep.subr.mxu0 %v1934_v35  ;;  %v1907_v59 = vcombine.low %v1899_v51, %v1906_v53  ;;  %v1943_v7 = vld [vmem:[%s3775_s3 + $0x100] sm:$0xff]  ;;  %v1960_v12 = vld [vmem:[%s3775_s3 + $0x188] sm:$0xff]  ;;  %v2162_v18 = vld [vmem:[%s3777_s5 + $0xf0] sm:$0xff] }
 0x1bb   : > { %2078 = vmatprep.subr.mxu1 %v3063_v8  ;;  %2662 = vmatpush3.msra.mxu0 %v1918_v37  ;;  %v1959_v17 = vld [vmem:[%s3775_s3 + $0x180] sm:$0xff]  ;;  %v2146_v20 = vld [vmem:[%s3777_s5 + $0x70] sm:$0xff]  ;;  %v2161_v21 = vld [vmem:[%s3777_s5 + $0xe8] sm:$0xff] }
 0x1bc   : > { %2079 = vmatpush1.msra.mxu1 %v1950_v38  ;;  %2663 = vmatprep.subr.mxu0 %v1933_v4  ;;  %v1909_v63 = vadd.f32 %v1907_v59, %v1872_v57  ;;  %v2145_v22 = vld [vmem:[%s3777_s5 + $0x68] sm:$0xff]  ;;  %v2179_v23 = vld [vmem:[%s3777_s5 + $0x178] sm:$0xff]  ;;  %v2160_v25 = vld [vmem:[%s3777_s5 + $0xe0] sm:$0xff] }
 0x1bd   : > { %2080 = vmatprep.subr.mxu1 %v3063_v8  ;;  %2664 = vmatpush3.msra.mxu0 %v1917_v24  ;;  %v2144_v26 = vld [vmem:[%s3777_s5 + $0x60] sm:$0xff]  ;;  %v2178_v27 = vld [vmem:[%s3777_s5 + $0x170] sm:$0xff]  ;;  %v2159_v28 = vld [vmem:[%s3777_s5 + $0xd8] sm:$0xff] }
 0x1be   : > { %2081 = vmatpush1.msra.mxu1 %v1949_v39  ;;  %2665 = vmatprep.subr.mxu0 %v1932_v42  ;;  %v1910_v5 = vmax.f32 %v1909_v63, 0.0  ;;  %v2143_v29 = vld [vmem:[%s3777_s5 + $0x58] sm:$0xff]  ;;  %v2177_v30 = vld [vmem:[%s3777_s5 + $0x168] sm:$0xff]  ;;  %v2158_v31 = vld [vmem:[%s3777_s5 + $0xd0] sm:$0xff] }
 0x1bf   : > { %2082 = vmatprep.subr.mxu1 %v3063_v8  ;;  %2666 = vmatpush3.msra.mxu0 %v1916_v43  ;;  %v2142_v32 = vld [vmem:[%s3777_s5 + $0x50] sm:$0xff]  ;;  %v2176_v33 = vld [vmem:[%s3777_s5 + $0x160] sm:$0xff]  ;;  %v2157_v34 = vld [vmem:[%s3777_s5 + $0xc8] sm:$0xff] }
 0x1c0   : > { %2083 = vmatpush1.msra.mxu1 %v1948_v45  ;;  %2667 = vmatprep.subr.mxu0 %v1931_v47  ;;  %v3550_v9 = vrot.slane %v1910_v5, %v3376_v56  ;;  %v1969_v11 = vcombine.high %v1910_v5, %v1910_v5  ;;  %v2141_v14 = vld [vmem:[%s3777_s5 + $0x48] sm:$0xff]  ;;  %v2175_v35 = vld [vmem:[%s3777_s5 + $0x158] sm:$0xff]  ;;  %v2156_v36 = vld [vmem:[%s3777_s5 + $0xc0] sm:$0xff] }
 0x1c1   : > { %2084 = vmatprep.subr.mxu1 %v3063_v8  ;;  %2668 = vmatpush3.msra.mxu0 %v1915_v49  ;;  %v2140_v37 = vld [vmem:[%s3777_s5 + $0x40] sm:$0xff]  ;;  %v2174_v38 = vld [vmem:[%s3777_s5 + $0x150] sm:$0xff]  ;;  %v2155_v4 = vld [vmem:[%s3777_s5 + $0xb8] sm:$0xff] }
 0x1c2   : > { %2085 = vmatpush1.msra.mxu1 %v1947_v50  ;;  %2669 = vmatprep.subr.mxu0 %v1930_v52  ;;  %v3561_v13 = vcombine.high %v3550_v9, %v3550_v9  ;;  %v3564_v15 = vrot.slane %v1969_v11, %v3376_v56  ;;  %v2139_v44 = vld [vmem:[%s3777_s5 + $0x38] sm:$0xff]  ;;  %v2173_v24 = vld [vmem:[%s3777_s5 + $0x148] sm:$0xff]  ;;  %v2154_v39 = vld [vmem:[%s3777_s5 + $0xb0] sm:$0xff] }
 0x1c3   : > { %2086 = vmatprep.subr.mxu1 %v3063_v8  ;;  %2670 = vmatpush3.msra.mxu0 %v1914_v54  ;;  %v2138_v40 = vld [vmem:[%s3777_s5 + $0x30] sm:$0xff]  ;;  %v2172_v41 = vld [vmem:[%s3777_s5 + $0x140] sm:$0xff]  ;;  %v2153_v19 = vld [vmem:[%s3777_s5 + $0xa8] sm:$0xff] }
 0x1c4   : > { %2087 = vmatpush1.msra.mxu1 %v1946_v55  ;;  %2671 = vmatprep.subr.mxu0 %v1929_v58  ;;  %v3579_v56 = vcombine.high %v3564_v15, %v3564_v15  ;;  %v2137_v42 = vld [vmem:[%s3777_s5 + $0x28] sm:$0xff]  ;;  %v2171_v0 = vld [vmem:[%s3777_s5 + $0x138] sm:$0xff]  ;;  %v2152_v43 = vld [vmem:[%s3777_s5 + $0xa0] sm:$0xff] }
 0x1c5   : > { %2088 = vmatprep.subr.mxu1 %v3063_v8  ;;  %2672 = vmatpush3.msra.mxu0 %v1913_v60  ;;  %v2136_v45 = vld [vmem:[%s3777_s5 + $0x20] sm:$0xff]  ;;  %v2170_v46 = vld [vmem:[%s3777_s5 + $0x130] sm:$0xff]  ;;  %v2151_v47 = vld [vmem:[%s3777_s5 + $0x98] sm:$0xff] }
 0x1c6   : > { %2089 = vmatpush1.msra.mxu1 %v1945_v61  ;;  %2673 = vmatprep.subr.mxu0 %v1928_v62  ;;  %v2135_v48 = vld [vmem:[%s3777_s5 + $0x18] sm:$0xff]  ;;  %v2169_v49 = vld [vmem:[%s3777_s5 + $0x128] sm:$0xff]  ;;  %v2150_v50 = vld [vmem:[%s3777_s5 + $0x90] sm:$0xff] }
 0x1c7   : > { %2090 = vmatprep.subr.mxu1 %v3063_v8  ;;  %2674 = vmatpush3.msra.mxu0 %v1912_v1  ;;  %v2134_v51 = vld [vmem:[%s3777_s5 + $0x10] sm:$0xff]  ;;  %v2168_v52 = vld [vmem:[%s3777_s5 + $0x120] sm:$0xff]  ;;  %v2149_v53 = vld [vmem:[%s3777_s5 + $0x88] sm:$0xff] }
 0x1c8   : > { %2091 = vmatpush1.msra.mxu1 %v1944_v2  ;;  %2675 = vmatprep.subr.mxu0 %v1927_v3  ;;  %v2133_v54 = vld [vmem:[%s3777_s5 + $0x8] sm:$0xff]  ;;  %v2167_v55 = vld [vmem:[%s3777_s5 + $0x118] sm:$0xff]  ;;  %v2148_v57 = vld [vmem:[%s3777_s5 + $0x80] sm:$0xff] }
 0x1c9   : > { %2092 = vmatprep.subr.mxu1 %v3063_v8  ;;  %2676 = vmatpush3.msra.mxu0 %v1911_v6  ;;  %v2132_v58 = vld [vmem:[%s3777_s5] sm:$0xff]  ;;  %v2166_v59 = vld [vmem:[%s3777_s5 + $0x110] sm:$0xff]  ;;  %v2165_v60 = vld [vmem:[%s3777_s5 + $0x108] sm:$0xff] }
 0x1ca   : > { %2093 = vmatpush1.msra.mxu1 %v1943_v7  ;;  %2680 = vmatprep.subr.mxu0 %v2163_v10  ;;  %v2164_v61 = vld [vmem:[%s3777_s5 + $0x100] sm:$0xff]  ;;  %v2181_v62 = vld [vmem:[%s3777_s5 + $0x188] sm:$0xff] }
 0x1cb   : > { %2122 = vmatprep.subr.mxu1 %v3063_v8  ;;  %2056 = vmatprep.mubr.f32.mxu0 %v3561_v13  ;;  %v2180_v63 = vld [vmem:[%s3777_s5 + $0x180] sm:$0xff] }
 0x1cc   : > { %2123 = vmatpush2.msra.mxu1 %v1960_v12  ;;  %2057 = vmatmul.mubr.f32.vlgmr.msra.gmra.mxu0 %v3550_v9  ;;  %v2637_v3 = vld [vmem:[%s3776_s4] ss:$0 sm:$0xff] }
 0x1cd   : > { %2124 = vmatprep.subr.mxu1 %v3063_v8  ;;  %2681 = vmatpush3.msra.mxu0 %v2147_v16 }
 0x1ce   : > { %2125 = vmatpush2.msra.mxu1 %v1959_v17  ;;  %2682 = vmatprep.subr.mxu0 %v2162_v18 }
 0x1cf   : > { %2638 = vmatprep.mubr.msk.f32.mxu1 %vm1989_vm14, %v3579_v56  ;;  %2683 = vmatpush3.msra.mxu0 %v2146_v20  ;;  %v2331_v20 = vld [vmem:[%s3779_s7] sm:$0x3] }
 0x1d0   : > { %2127 = vmatmul.mubr.f32.vlgmr.msra.gmra.mxu1 %v3564_v15  ;;  %2684 = vmatprep.subr.mxu0 %v2161_v21 }
 0x1d1   : > { %2259 = vmatprep.subr.mxu1 %v3063_v8  ;;  %2685 = vmatpush3.msra.mxu0 %v2145_v22 }
 0x1d2   : > { %2260 = vmatpush1.msra.mxu1 %v2179_v23  ;;  %2686 = vmatprep.subr.mxu0 %v2160_v25 }
 0x1d3   : > { %2261 = vmatprep.subr.mxu1 %v3063_v8  ;;  %2687 = vmatpush3.msra.mxu0 %v2144_v26 }
 0x1d4   : > { %2262 = vmatpush1.msra.mxu1 %v2178_v27  ;;  %2688 = vmatprep.subr.mxu0 %v2159_v28 }
 0x1d5   : > { %2263 = vmatprep.subr.mxu1 %v3063_v8  ;;  %2689 = vmatpush3.msra.mxu0 %v2143_v29 }
 0x1d6   : > { %2264 = vmatpush1.msra.mxu1 %v2177_v30  ;;  %2690 = vmatprep.subr.mxu0 %v2158_v31 }
 0x1d7   : > { %2265 = vmatprep.subr.mxu1 %v3063_v8  ;;  %2691 = vmatpush3.msra.mxu0 %v2142_v32 }
 0x1d8   : > { %2266 = vmatpush1.msra.mxu1 %v2176_v33  ;;  %2692 = vmatprep.subr.mxu0 %v2157_v34 }
 0x1d9   : > { %2267 = vmatprep.subr.mxu1 %v3063_v8  ;;  %2693 = vmatpush3.msra.mxu0 %v2141_v14 }
 0x1da   : > { %2268 = vmatpush1.msra.mxu1 %v2175_v35  ;;  %2694 = vmatprep.subr.mxu0 %v2156_v36 }
 0x1db   : > { %2269 = vmatprep.subr.mxu1 %v3063_v8  ;;  %2695 = vmatpush3.msra.mxu0 %v2140_v37 }
 0x1dc   : > { %2270 = vmatpush1.msra.mxu1 %v2174_v38  ;;  %2696 = vmatprep.subr.mxu0 %v2155_v4 }
 0x1dd   : > { %2271 = vmatprep.subr.mxu1 %v3063_v8  ;;  %2697 = vmatpush3.msra.mxu0 %v2139_v44 }
 0x1de   : > { %2272 = vmatpush1.msra.mxu1 %v2173_v24  ;;  %2698 = vmatprep.subr.mxu0 %v2154_v39 }
 0x1df   : > { %2273 = vmatprep.subr.mxu1 %v3063_v8  ;;  %2699 = vmatpush3.msra.mxu0 %v2138_v40 }
 0x1e0   : > { %2274 = vmatpush1.msra.mxu1 %v2172_v41  ;;  %2700 = vmatprep.subr.mxu0 %v2153_v19 }
 0x1e1   : > { %2275 = vmatprep.subr.mxu1 %v3063_v8  ;;  %2701 = vmatpush3.msra.mxu0 %v2137_v42 }
 0x1e2   : > { %2276 = vmatpush1.msra.mxu1 %v2171_v0  ;;  %2702 = vmatprep.subr.mxu0 %v2152_v43 }
 0x1e3   : > { %2277 = vmatprep.subr.mxu1 %v3063_v8  ;;  %2703 = vmatpush3.msra.mxu0 %v2136_v45 }
 0x1e4   : > { %2278 = vmatpush1.msra.mxu1 %v2170_v46  ;;  %2704 = vmatprep.subr.mxu0 %v2151_v47 }
 0x1e5   : > { %2279 = vmatprep.subr.mxu1 %v3063_v8  ;;  %2705 = vmatpush3.msra.mxu0 %v2135_v48 }
 0x1e6   : > { %2280 = vmatpush1.msra.mxu1 %v2169_v49  ;;  %2706 = vmatprep.subr.mxu0 %v2150_v50 }
 0x1e7   : > { %2281 = vmatprep.subr.mxu1 %v3063_v8  ;;  %2707 = vmatpush3.msra.mxu0 %v2134_v51 }
 0x1e8   : > { %2282 = vmatpush1.msra.mxu1 %v2168_v52  ;;  %2708 = vmatprep.subr.mxu0 %v2149_v53 }
 0x1e9   : > { %2283 = vmatprep.subr.mxu1 %v3063_v8  ;;  %2709 = vmatpush3.msra.mxu0 %v2133_v54 }
 0x1ea   : > { %2284 = vmatpush1.msra.mxu1 %v2167_v55  ;;  %2710 = vmatprep.subr.mxu0 %v2148_v57 }
 0x1eb   : > { %2285 = vmatprep.subr.mxu1 %v3063_v8  ;;  %2711 = vmatpush3.msra.mxu0 %v2132_v58 }
 0x1ec   : > { %2253 = vmatprep.mubr.f32.mxu0 %v3561_v13  ;;  %2286 = vmatpush1.msra.mxu1 %v2166_v59 }
 0x1ed   : > { %2254 = vmatmul.mubr.f32.vlgmr.msra.gmra.mxu0 %v3550_v9  ;;  %2287 = vmatprep.subr.mxu1 %v3063_v8 }
 0x1ee   : > { %2640 = vmatprep.mubr.msk.f32.mxu1 %vm1989_vm14, %v3579_v56  ;;  %2288 = vmatpush1.msra.mxu1 %v2165_v60 }
 0x1ef   : > { %2289 = vmatprep.subr.mxu1 %v3063_v8 }
 0x1f0   : > { %2290 = vmatpush1.msra.mxu1 %v2164_v61 }
 0x1f1   : > { %2319 = vmatprep.subr.mxu1 %v3063_v8 }
 0x1f2   : > { %2320 = vmatpush2.msra.mxu1 %v2181_v62 }
 0x1f3   : > { %2321 = vmatprep.subr.mxu1 %v3063_v8  ;;  %v2639_v8 = vld [vmem:[%s3778_s6] ss:$0 sm:$0xff] }
 0x1f4   : > { %2322 = vmatpush2.msra.mxu1 %v2180_v63 }
 0x1f5   : > { %2324 = vmatmul.mubr.f32.vlgmr.msra.gmra.mxu1 %v3564_v15 }
 0x28c   : > { %v2677_v1 = vpop.f32.mrf.mxu0 }
 0x28e   : > { %v2678_v2 = vpop.f32.mrf.mxu0 }
 0x28f   : > { %v2679_v5 = vadd.f32 %v2678_v2, %v2677_v1 }
 0x290   : > { %v2128_v6 = vpop.f32.mrf.mxu1 }
 0x291   : > { %v2059_v7 = vadd.f32 %v2679_v5, %v2637_v3 }
 0x292   : > { %v2130_v9 = vpop.f32.mrf.mxu1 }
 0x293   : > { %v2129_v10 = vadd.f32 %v2128_v6, %v2059_v7 }
 0x295   : > { %2335 = vrot.lane.b32.xlu0 %v2129_v10, %s3064_s15 }
 0x2ad   : > { %v2712_v11 = vpop.f32.mrf.mxu0 }
 0x2af   : > { %v2713_v12 = vpop.f32.mrf.mxu0 }
 0x2b0   : > { %v2714_v13 = vadd.f32 %v2713_v12, %v2712_v11 }
 0x2b2   : > { %v2256_v15 = vadd.f32 %v2714_v13, %v2639_v8 }
 0x2b5   : > { %v2325_v16 = vpop.f32.mrf.mxu1 }
 0x2b6   : > { %v2326_v17 = vadd.f32 %v2325_v16, %v2256_v15 }
 0x2b7   : > { %v2327_v18 = vpop.f32.mrf.mxu1 }
 0x2b8   : > { %v2329_v56 = vmul.f32 1.442695, %v2326_v17 }
 0x2ba   : > { %3034 = vpow2.f32 %v2329_v56 }
 0x2c7   : > { %v3035_v21 = vpop.eup %3034 }
 0x2c8   : > { %2339 = vrot.lane.b32.xlu0 %v3035_v21, %s3065_s20  ;;  %v2332_v22 = vmul.f32 %v3035_v21, %v2331_v20 }
 0x2ca   : > { %v2333_v23 = vadd.f32 %v2332_v22, %v2129_v10 }
 0x307   : > { %v2336_v25 = vpop.permute.xlu0 %2335 }
 0x308   : > { %v2343_v26 = vsel %vm2342_vm15, %v2333_v23, %v2336_v25 }
 0x33a   : > { %v2340_v27 = vpop.permute.xlu0 %2339 }
 0x33b   : > { %v2344_v28 = vsel %vm1989_vm14, %v2343_v26, %v2340_v27 }
 0x33c   : > { %2346 = vst.msk [vmem:[%s3780_s8] sm:$0x3] %vm2345_vm0, %v2344_v28 }
 0x33d PF: > { %s18_s29 = sadd.s32 1, %s3058_s29   ;;  %s3781_s27 = smov %s3054_s28 }
 0x33e   : > { %p15_p8 = scmp.ge.s32.totalorder %s18_s29, 5   ;;  %s3782_s28 = smov %s3784_s30 }
 0x340   :  { %17 = sbr.rel (!%p15_p8) target bundleno = 2 (0x2), region = 96 }

</bundles_post_ra>
